<compile_context>
chip_gen: v7x
topology: tpu7x:2x2x1
jax: 0.10.0
libtpu: 0.0.40
codegen_flags: <defaults>
</compile_context>

<pallas_src>
import functools

import jax
import jax.numpy as jnp
from jax import lax
from jax.experimental import pallas as pl
from jax.experimental.pallas import tpu as pltpu


NODE_ALIGN = 256   # lane-dense A + full MXU contraction depth (v6e/v7x = 256)
FEAT_ALIGN = 128   # lane-dense feature dims (TODO(synk): 256 on v6e/v7x for big F)
ROW_TILE = 256     # row tile for the streamed (large-N) path


# ---------------------------------------------------------------------------
# Kernels
# ---------------------------------------------------------------------------
def fused_sage_kernel(a_ref, x_ref, *refs, num_layers, n_valid):
    """Fully-resident multi-layer kernel.

    refs = (w_cat_0, b_0, w_cat_1, b_1, ..., o_ref)
    w_cat_l = [W_l | W_r] (bf16, lane-padded), b_l = bias (f32, lane-padded).
    Layer math:  out = A @ (X @ W_l) + X @ W_r + b   (+ ReLU except last layer)
    """
    o_ref = refs[-1]
    a = a_ref[...]          # bf16 [Np, Np]  row-normalized mean aggregation
    h = x_ref[...]          # bf16 [Np, Fin_p]

    for layer in range(num_layers):
        w_cat = refs[2 * layer][...]       # bf16 [Fin_p, 2*Fout_p]
        bias = refs[2 * layer + 1][...]    # f32  [1, Fout_p]
        f_out = w_cat.shape[1] // 2

        # One fused MXU pass for both linear transforms (f32 accumulation).
        xw = jnp.dot(h, w_cat, preferred_element_type=jnp.float32)
        xw_l = xw[:, :f_out]               # lane-aligned (Fout_p % 128 == 0)
        xw_r = xw[:, f_out:]

        # Mean aggregation applied AFTER the projection: A @ (X W_l).
        out = jnp.dot(a, xw_l.astype(jnp.bfloat16),
                      preferred_element_type=jnp.float32)
        out = out + xw_r + bias

        if layer < num_layers - 1:
            out = jnp.maximum(out, 0.0)    # ReLU (dropout = inference no-op)
            # Zero pad rows so they never leak into later math (cheap VPU filler).
            rows = lax.broadcasted_iota(jnp.int32, out.shape, 0)
            out = jnp.where(rows < n_valid, out, 0.0)
            h = out.astype(jnp.bfloat16)   # stays in VMEM / vregs
        else:
            o_ref[...] = out.astype(o_ref.dtype)


def sage_project_kernel(h_ref, w_ref, b_ref, xwl_ref, xwrb_ref):
    """Row tile of XW = H @ [W_l | W_r]; emits XW_l (bf16) and XW_r + b (f32)."""
    f_out_p = xwl_ref.shape[-1]
    xw = jnp.dot(h_ref[...], w_ref[...], preferred_element_type=jnp.float32)
    xwl_ref[...] = xw[:, :f_out_p].astype(xwl_ref.dtype)
    xwrb_ref[...] = xw[:, f_out_p:] + b_ref[...]


def sage_aggregate_kernel(a_ref, xwl_ref, xwrb_ref, o_ref, *,
                          apply_relu, n_valid, row_tile):
    """out_tile = A_strip @ XW_l + (XW_r + b)_tile  (+ ReLU / pad-row masking)."""
    out = jnp.dot(a_ref[...], xwl_ref[...], preferred_element_type=jnp.float32)
    out = out + xwrb_ref[...]
    if apply_relu:
        out = jnp.maximum(out, 0.0)
        rows = (pl.program_id(0) * row_tile
                + lax.broadcasted_iota(jnp.int32, out.shape, 0))
        out = jnp.where(rows < n_valid, out, 0.0)
    o_ref[...] = out.astype(o_ref.dtype)


# ---------------------------------------------------------------------------
# Helpers (padding, adjacency, VMEM sizing)
# ---------------------------------------------------------------------------
def _round_up(v, m):
    return ((v + m - 1) // m) * m


def _pad2d(x, rows, cols):
    return jnp.pad(x, ((0, rows - x.shape[0]), (0, cols - x.shape[1])))


def _vmem_capacity_bytes():
    try:
        info = pltpu.get_tpu_info()
        return int(getattr(info, "vmem_capacity_bytes", 64 * 1024 * 1024))
    except Exception:
        return 64 * 1024 * 1024   # conservative (v7x per-TC) fallback


def _clamp_vmem_limit(needed_bytes, cap_bytes):
    limit = max(int(needed_bytes) * 2 + (4 << 20), 32 << 20)
    return min(limit, int(cap_bytes * 0.9))


def build_mean_adj(edge_index, num_nodes_padded):
    """A[t, s] = 1 / in_deg(t) per edge s->t; zero-degree rows stay 0.

    Built without the dense f32 intermediate + N^2 row-sum of the naive path:
    in-degree via a 1-D segment sum, then 1/deg scattered straight into the
    bf16 [Np, Np] buffer.
    """
    src = edge_index[0]
    dst = edge_index[1]
    deg = jnp.zeros((num_nodes_padded,), jnp.float32).at[dst].add(1.0)
    inv = 1.0 / jnp.maximum(deg, 1.0)
    vals = inv[dst].astype(jnp.bfloat16)
    a = jnp.zeros((num_nodes_padded, num_nodes_padded), jnp.bfloat16)
    a = a.at[dst, src].add(vals)
    return a


# ---------------------------------------------------------------------------
# Parameters: init + one-time padding/concat (hoisted out of the forward path)
# ---------------------------------------------------------------------------
def init_params(key, in_channels, hidden_channels, out_channels, num_layers=2):
    dims = [in_channels] + [hidden_channels] * (num_layers - 1) + [out_channels]
    params = []
    for layer in range(num_layers):
        f_in, f_out = dims[layer], dims[layer + 1]
        key, k1, k2 = jax.random.split(key, 3)
        scale = 1.0 / jnp.sqrt(jnp.float32(f_in))
        w_l = jax.random.uniform(k1, (f_in, f_out), jnp.float32, -scale, scale)
        w_r = jax.random.uniform(k2, (f_in, f_out), jnp.float32, -scale, scale)
        b = jnp.zeros((f_out,), jnp.float32)
        params.append((w_l, w_r, b))
    return params


def prepare_params(params):
    """Pad weights to lane-dense shapes and build [W_l | W_r] ONCE (not per fwd)."""
    prepared = []
    prev_p = _round_up(params[0][0].shape[0], FEAT_ALIGN)
    for (w_l, w_r, b) in params:
        f_out = w_l.shape[1]
        f_out_p = _round_up(f_out, FEAT_ALIGN)
        w_cat = jnp.concatenate(
            [_pad2d(w_l, prev_p, f_out_p), _pad2d(w_r, prev_p, f_out_p)],
            axis=1).astype(jnp.bfloat16)
        b_p = jnp.pad(b, (0, f_out_p - f_out)).reshape(1, f_out_p).astype(jnp.float32)
        prepared.append((w_cat, b_p, f_out))
        prev_p = f_out_p
    return prepared


def _resident_footprint(prepared, n_p, f_in_p, out_dtype):
    bytes_weights = sum(w.size * w.dtype.itemsize + b.size * b.dtype.itemsize
                        for (w, b, _) in prepared)
    f_max_p = max(w.shape[1] // 2 for (w, _, _) in prepared)
    f_out_last_p = prepared[-1][0].shape[1] // 2
    return (2 * n_p * n_p                         # A (bf16)
            + 2 * n_p * f_in_p                    # X (bf16)
            + bytes_weights
            + n_p * f_max_p * 14                  # xw(f32,2F) + out(f32) + h(bf16)
            + n_p * f_out_last_p * jnp.dtype(out_dtype).itemsize)


# ---------------------------------------------------------------------------
# Forward paths
# ---------------------------------------------------------------------------
def _forward_resident(prepared, a, x_p, n, n_p, out_dtype, vmem_cap, footprint):
    num_layers = len(prepared)
    f_out_last_p = prepared[-1][0].shape[1] // 2

    kernel_args = [a, x_p]
    flops = 0
    bytes_accessed = (a.size * 2 + x_p.size * 2
                      + n_p * f_out_last_p * jnp.dtype(out_dtype).itemsize)
    fin = x_p.shape[1]
    for (w_cat, b_p, _) in prepared:
        f_out_p = w_cat.shape[1] // 2
        kernel_args += [w_cat, b_p]
        flops += 2 * n_p * fin * 2 * f_out_p      # X @ [W_l | W_r]
        flops += 2 * n_p * n_p * f_out_p          # A @ (X W_l)
        bytes_accessed += w_cat.size * 2 + b_p.size * 4
        fin = f_out_p

    kernel = functools.partial(fused_sage_kernel,
                               num_layers=num_layers, n_valid=n)
    # TODO(synk): grid-less => single TensorCore on v7x; force_tiled=True uses
    # the row-tiled path with a "parallel" axis if megacore sharding matters.
    return pl.pallas_call(
        kernel,
        out_shape=jax.ShapeDtypeStruct((n_p, f_out_last_p), out_dtype),
        in_specs=[pl.BlockSpec(memory_space=pltpu.MemorySpace.VMEM)]
        * len(kernel_args),
        out_specs=pl.BlockSpec(memory_space=pltpu.MemorySpace.VMEM),
        compiler_params=pltpu.CompilerParams(
            vmem_limit_bytes=_clamp_vmem_limit(footprint, vmem_cap)),
        cost_estimate=pl.CostEstimate(flops=int(flops), transcendentals=0,
                                      bytes_accessed=int(bytes_accessed)),
    )(*kernel_args)


def _forward_tiled(prepared, a, x_p, n, n_p, out_dtype, vmem_cap):
    """Per-layer, row-tiled path: A streamed in (TM, Np) strips, rest resident."""
    num_layers = len(prepared)
    tm = min(ROW_TILE, n_p)
    grid = (n_p // tm,)

    h = x_p
    for layer, (w_cat, b_p, _) in enumerate(prepared):
        f_in_p = w_cat.shape[0]
        f_out_p = w_cat.shape[1] // 2
        is_last = layer == num_layers - 1
        h_dtype = out_dtype if is_last else jnp.bfloat16

        # -- projection: XW = H @ [W_l | W_r] (row-tiled, weights resident) --
        proj_bytes = (2 * tm * f_in_p * 2 + w_cat.size * 2 + b_p.size * 4
                      + 2 * tm * f_out_p * (2 + 4))
        xw_l, xw_rb = pl.pallas_call(
            sage_project_kernel,
            out_shape=(jax.ShapeDtypeStruct((n_p, f_out_p), jnp.bfloat16),
                       jax.ShapeDtypeStruct((n_p, f_out_p), jnp.float32)),
            grid=grid,
            in_specs=[pl.BlockSpec((tm, f_in_p), lambda i: (i, 0)),
                      pl.BlockSpec((f_in_p, 2 * f_out_p), lambda i: (0, 0)),
                      pl.BlockSpec((1, f_out_p), lambda i: (0, 0))],
            out_specs=(pl.BlockSpec((tm, f_out_p), lambda i: (i, 0)),
                       pl.BlockSpec((tm, f_out_p), lambda i: (i, 0))),
            compiler_params=pltpu.CompilerParams(
                dimension_semantics=("parallel",),
                vmem_limit_bytes=_clamp_vmem_limit(proj_bytes, vmem_cap)),
            cost_estimate=pl.CostEstimate(
                flops=int(2 * n_p * f_in_p * 2 * f_out_p), transcendentals=0,
                bytes_accessed=int(h.size * h.dtype.itemsize + w_cat.size * 2
                                   + n_p * f_out_p * 6)),
        )(h, w_cat, b_p)

        # -- aggregation: out = A_strip @ XW_l + (XW_r + b), A streamed --
        agg_bytes = (2 * tm * n_p * 2              # double-buffered A strip
                     + 2 * n_p * f_out_p * 2       # resident XW_l
                     + 2 * tm * f_out_p * (4 + jnp.dtype(h_dtype).itemsize))
        h = pl.pallas_call(
            functools.partial(sage_aggregate_kernel, apply_relu=not is_last,
                              n_valid=n, row_tile=tm),
            out_shape=jax.ShapeDtypeStruct((n_p, f_out_p), h_dtype),
            grid=grid,
            in_specs=[pl.BlockSpec((tm, n_p), lambda i: (i, 0)),
                      pl.BlockSpec((n_p, f_out_p), lambda i: (0, 0)),
                      pl.BlockSpec((tm, f_out_p), lambda i: (i, 0))],
            out_specs=pl.BlockSpec((tm, f_out_p), lambda i: (i, 0)),
            compiler_params=pltpu.CompilerParams(
                dimension_semantics=("parallel",),
                vmem_limit_bytes=_clamp_vmem_limit(agg_bytes, vmem_cap)),
            cost_estimate=pl.CostEstimate(
                flops=int(2 * n_p * n_p * f_out_p), transcendentals=0,
                bytes_accessed=int(a.size * 2 + n_p * f_out_p
                                   * (2 + 4 + jnp.dtype(h_dtype).itemsize))),
        )(a, xw_l, xw_rb)
    return h


def graphsage_encoder_forward(prepared_params, x, edge_index, *,
                              out_dtype=jnp.bfloat16, force_tiled=False):
    """Mirrors GraphSAGEEncoder.forward (inference mode)."""
    n, f_in = x.shape
    f_in_p = prepared_params[0][0].shape[0]
    f_out_last = prepared_params[-1][2]
    assert f_in <= f_in_p

    n_p = _round_up(n, NODE_ALIGN)
    a = build_mean_adj(edge_index, n_p)                      # bf16 [Np, Np]
    x_p = _pad2d(x, n_p, f_in_p).astype(jnp.bfloat16)        # bf16 [Np, Fin_p]

    vmem_cap = _vmem_capacity_bytes()
    footprint = _resident_footprint(prepared_params, n_p, f_in_p, out_dtype)

    if not force_tiled and footprint <= 0.75 * vmem_cap:
        out_p = _forward_resident(prepared_params, a, x_p, n, n_p,
                                  out_dtype, vmem_cap, footprint)
    else:
        out_p = _forward_tiled(prepared_params, a, x_p, n, n_p,
                               out_dtype, vmem_cap)
    return out_p[:n, :f_out_last]


# ---------------------------------------------------------------------------
# Pure-JAX f32 reference (validates the bf16 kernel paths)
# ---------------------------------------------------------------------------
def graphsage_reference(params, x, edge_index):
    n = x.shape[0]
    src, dst = edge_index[0], edge_index[1]
    adj = jnp.zeros((n, n), jnp.float32).at[dst, src].add(1.0)
    deg = adj.sum(axis=1, keepdims=True)
    a = adj / jnp.maximum(deg, 1.0)
    h = x
    for i, (w_l, w_r, b) in enumerate(params):
        h_new = (a @ h) @ w_l + h @ w_r + b
        if i < len(params) - 1:
            h_new = jnp.maximum(h_new, 0.0)
        h = h_new
    return h


# ---------------------------------------------------------------------------
if __name__ == "__main__":
    key = jax.random.PRNGKey(0)
    k_x, k_e, k_p = jax.random.split(key, 3)

    num_nodes = 16
    in_channels = 32       # resolved lazily in PyTorch (SAGEConv(-1, ...))
    hidden_channels = 32
    out_channels = 16
    num_edges = 48

    x = jax.random.normal(k_x, (num_nodes, in_channels), jnp.float32)
    edge_index = jax.random.randint(k_e, (2, num_edges), 0, num_nodes, jnp.int32)

    params = init_params(k_p, in_channels, hidden_channels, out_channels,
                         num_layers=2)
    prepared = prepare_params(params)          # one-time padding / [W_l|W_r]

    ref = graphsage_reference(params, x, edge_index)

    # Fused, fully-resident path (auto-selected for this graph size).
    out = graphsage_encoder_forward(prepared, x, edge_index)
    jax.block_until_ready(out)
    assert out.shape == (num_nodes, out_channels)
    assert jnp.all(jnp.isfinite(out.astype(jnp.float32)))
    err = float(jnp.max(jnp.abs(out.astype(jnp.float32) - ref)))
    assert err < 0.2, f"resident path max abs err vs f32 reference: {err}"

    # Also exercise the row-tiled streaming path (used for large graphs).
    out_t = graphsage_encoder_forward(prepared, x, edge_index, force_tiled=True)
    jax.block_until_ready(out_t)
    assert out_t.shape == (num_nodes, out_channels)
    err_t = float(jnp.max(jnp.abs(out_t.astype(jnp.float32) - ref)))
    assert err_t < 0.2, f"tiled path max abs err vs f32 reference: {err_t}"

    print("KERNEL_OK")
</pallas_src>

<mosaic_0001>
module attributes {stable_mosaic.version = 11 : i64} {
  func.func @fused_sage_kernel(%arg0: memref<256x256xbf16, #tpu.memory_space<vmem>>, %arg1: memref<256x128xbf16, #tpu.memory_space<vmem>>, %arg2: memref<128x256xbf16, #tpu.memory_space<vmem>>, %arg3: memref<1x128xf32, #tpu.memory_space<vmem>>, %arg4: memref<128x256xbf16, #tpu.memory_space<vmem>>, %arg5: memref<1x128xf32, #tpu.memory_space<vmem>>, %arg6: memref<256x128xbf16, #tpu.memory_space<vmem>>) attributes {dimension_semantics = [], scalar_prefetch = 0 : i64, scratch_operands = 0 : i64, tpu.core_type = #tpu.core_type<tc>} {
    %c0 = arith.constant 0 : index
    %c0_0 = arith.constant 0 : index
    %0 = vector.load %arg0[%c0, %c0_0] : memref<256x256xbf16, #tpu.memory_space<vmem>>, vector<256x256xbf16>
    %c0_1 = arith.constant 0 : index
    %c0_2 = arith.constant 0 : index
    %1 = vector.load %arg1[%c0_1, %c0_2] : memref<256x128xbf16, #tpu.memory_space<vmem>>, vector<256x128xbf16>
    %c0_3 = arith.constant 0 : index
    %c0_4 = arith.constant 0 : index
    %2 = vector.load %arg2[%c0_3, %c0_4] : memref<128x256xbf16, #tpu.memory_space<vmem>>, vector<128x256xbf16>
    %c0_5 = arith.constant 0 : index
    %c0_6 = arith.constant 0 : index
    %3 = vector.load %arg3[%c0_5, %c0_6] : memref<1x128xf32, #tpu.memory_space<vmem>>, vector<1x128xf32>
    %cst = arith.constant dense<0.000000e+00> : vector<256x256xf32>
    %4 = tpu.matmul %1, %2, %cst {dimension_numbers = #tpu.dot_dimension_numbers<[1], [0], [0], [1], [0, 0, 1, 1], [], []>} : vector<256x128xbf16>, vector<128x256xbf16>, vector<256x256xf32> -> vector<256x256xf32>
    %5 = vector.extract_strided_slice %4 {offsets = [0, 0], sizes = [256, 128], strides = [1, 1]} : vector<256x256xf32> to vector<256x128xf32>
    %6 = vector.extract_strided_slice %4 {offsets = [0, 128], sizes = [256, 128], strides = [1, 1]} : vector<256x256xf32> to vector<256x128xf32>
    %7 = arith.truncf %5 : vector<256x128xf32> to vector<256x128xbf16>
    %cst_7 = arith.constant dense<0.000000e+00> : vector<256x128xf32>
    %8 = tpu.matmul %0, %7, %cst_7 {dimension_numbers = #tpu.dot_dimension_numbers<[1], [0], [0], [1], [0, 0, 1, 1], [], []>} : vector<256x256xbf16>, vector<256x128xbf16>, vector<256x128xf32> -> vector<256x128xf32>
    %9 = arith.addf %8, %6 : vector<256x128xf32>
    %10 = vector.broadcast %3 : vector<1x128xf32> to vector<256x128xf32>
    %11 = arith.addf %9, %10 : vector<256x128xf32>
    %cst_8 = arith.constant 0.000000e+00 : f32
    %12 = vector.broadcast %cst_8 : f32 to vector<256x128xf32>
    %13 = arith.maximumf %11, %12 : vector<256x128xf32>
    %14 = tpu.iota {dimensions = array<i32: 0>} : vector<256x128xi32>
    %c16_i32 = arith.constant 16 : i32
    %15 = vector.broadcast %c16_i32 : i32 to vector<256x128xi32>
    %16 = arith.cmpi slt, %14, %15 : vector<256x128xi32>
    %cst_9 = arith.constant 0.000000e+00 : f32
    %17 = vector.broadcast %cst_9 : f32 to vector<256x128xf32>
    %18 = arith.select %16, %13, %17 : vector<256x128xi1>, vector<256x128xf32>
    %19 = arith.truncf %18 : vector<256x128xf32> to vector<256x128xbf16>
    %c0_10 = arith.constant 0 : index
    %c0_11 = arith.constant 0 : index
    %20 = vector.load %arg4[%c0_10, %c0_11] : memref<128x256xbf16, #tpu.memory_space<vmem>>, vector<128x256xbf16>
    %c0_12 = arith.constant 0 : index
    %c0_13 = arith.constant 0 : index
    %21 = vector.load %arg5[%c0_12, %c0_13] : memref<1x128xf32, #tpu.memory_space<vmem>>, vector<1x128xf32>
    %cst_14 = arith.constant dense<0.000000e+00> : vector<256x256xf32>
    %22 = tpu.matmul %19, %20, %cst_14 {dimension_numbers = #tpu.dot_dimension_numbers<[1], [0], [0], [1], [0, 0, 1, 1], [], []>} : vector<256x128xbf16>, vector<128x256xbf16>, vector<256x256xf32> -> vector<256x256xf32>
    %23 = vector.extract_strided_slice %22 {offsets = [0, 0], sizes = [256, 128], strides = [1, 1]} : vector<256x256xf32> to vector<256x128xf32>
    %24 = vector.extract_strided_slice %22 {offsets = [0, 128], sizes = [256, 128], strides = [1, 1]} : vector<256x256xf32> to vector<256x128xf32>
    %25 = arith.truncf %23 : vector<256x128xf32> to vector<256x128xbf16>
    %cst_15 = arith.constant dense<0.000000e+00> : vector<256x128xf32>
    %26 = tpu.matmul %0, %25, %cst_15 {dimension_numbers = #tpu.dot_dimension_numbers<[1], [0], [0], [1], [0, 0, 1, 1], [], []>} : vector<256x256xbf16>, vector<256x128xbf16>, vector<256x128xf32> -> vector<256x128xf32>
    %27 = arith.addf %26, %24 : vector<256x128xf32>
    %28 = vector.broadcast %21 : vector<1x128xf32> to vector<256x128xf32>
    %29 = arith.addf %27, %28 : vector<256x128xf32>
    %30 = arith.truncf %29 : vector<256x128xf32> to vector<256x128xbf16>
    %c0_16 = arith.constant 0 : index
    %c0_17 = arith.constant 0 : index
    %31 = vector.load %arg6[%c0_16, %c0_17] : memref<256x128xbf16, #tpu.memory_space<vmem>>, vector<256x128xbf16>
    tpu.vector_store %arg6[%c0_16, %c0_17], %30 {strides = array<i32>} : memref<256x128xbf16, #tpu.memory_space<vmem>>, vector<256x128xbf16>,
    return
  }
}

</mosaic_0001>

<bundles_post_ra>
// kernel: tpu_custom_call.1
= control target key start
LH: loop header
LB: loop body
LE: loop exit
PB: predicated region body
PF: predicated region fallthrough
CT: control target
= control target key end

     0   :  { %11 = vsyncpa [#allocation3], 0  ;;  %s2900_s0 = inlined_call_operand.hbm [shape: bf16[256,256], index: 0, kind: input, shape index: {}]   ;;  %s2901_s1 = inlined_call_operand.hbm [shape: bf16[256,128], index: 1, kind: input, shape index: {}]   ;;  %s2902_s2 = inlined_call_operand.hbm [shape: bf16[128,256], index: 2, kind: input, shape index: {}]   ;;  %s2903_s3 = inlined_call_operand.vmem [shape: f32[1,128], index: 3, kind: input, shape index: {}]   ;;  %s2904_s4 = inlined_call_operand.hbm [shape: bf16[128,256], index: 4, kind: input, shape index: {}]   ;;  %s2905_s5 = inlined_call_operand.vmem [shape: f32[1,128], index: 5, kind: input, shape index: {}]   ;;  %s2906_s6 = inlined_call_operand.hbm [shape: bf16[256,128], index: 6, kind: output, shape index: {}]  }
   0x1   :  { %12 = vsyncpa [#allocation6], 0 }
   0x2   :  { %13 = vsyncpa [#allocation9], 0 }
   0x3   :  { %14 = vsyncpa [#allocation4], 0  ;;  %s2440_s21 = smov [#allocation5]   ;;  %s2322_s25 = scalar_lea.hbm %s2901_s1, 2048 }
   0x4   :  { %s32_s22 = sshll.u32 %s2440_s21, 4  ;;  %p2323_p0 = scmp.ne.s32.totalorder %s2901_s1, %s2322_s25  ;;  %s33_s22 = int_to_ptr.vmem [resolvable:$true] %s32_s22 }
   0x5   :  { %p2326_p1 = scmp.lt.u32.totalorder %s2322_s25, %s2901_s1 }
   0x7   :  { %p2328_p2 = pnand %p2326_p1, %p2323_p0 }
   0x9   :  { %2331 = shalt.err (!%p2328_p2)
}
   0xa   :  { %s2332_s30 = scalar_lea.vmem %s33_s22, 2048  ;;  %p2337_p4 = scmp.lt.s32.totalorder %s33_s22, %s33_s22 }
   0xb   :  { %p2333_p3 = scmp.ne.s32.totalorder %s33_s22, %s2332_s30  ;;  %p2338_p5 = scmp.lt.s32.totalorder %s2332_s30, %s2332_s30 }
   0xd   :  { %p2339_p6 = por %p2338_p5, %p2337_p4 }
   0xf   :  { %p2340_p7 = pnand %p2339_p6, %p2333_p3 }
  0x11   :  { %2343 = shalt.err (!%p2340_p7)
}
  0x12   :  { %s2441_s7 = smov 64   ;;  %s2442_s8 = smov 4  }
  0x13   :  { %38 = dma.hbm_to_vmem [thread:$0]  %s2901_s1, 2048, %s33_s22, [#allocation6], %s2441_s7, %s2441_s7, %s2442_s8  }
  0x14   :  { %s2443_s11 = smov [#allocation2]   ;;  %s2344_s15 = scalar_lea.hbm %s2900_s0, 4096 }
  0x15   :  { %s20_s12 = sshll.u32 %s2443_s11, 4  ;;  %p2345_p8 = scmp.ne.s32.totalorder %s2900_s0, %s2344_s15  ;;  %s21_s12 = int_to_ptr.vmem [resolvable:$true] %s20_s12 }
  0x16   :  { %p2348_p9 = scmp.lt.u32.totalorder %s2344_s15, %s2900_s0 }
  0x18   :  { %p2350_p10 = pnand %p2348_p9, %p2345_p8 }
  0x1a   :  { %2353 = shalt.err (!%p2350_p10)
}
  0x1b   :  { %s2354_s20 = scalar_lea.vmem %s21_s12, 4096  ;;  %p2359_p12 = scmp.lt.s32.totalorder %s21_s12, %s21_s12 }
  0x1c   :  { %p2355_p11 = scmp.ne.s32.totalorder %s21_s12, %s2354_s20  ;;  %p2360_p13 = scmp.lt.s32.totalorder %s2354_s20, %s2354_s20 }
  0x1e   :  { %p2361_p0 = por %p2360_p13, %p2359_p12 }
  0x20   :  { %p2362_p1 = pnand %p2361_p0, %p2355_p11 }
  0x22   :  { %2365 = shalt.err (!%p2362_p1)
}
  0x23   :  { %s2444_s1 = smov 128   ;;  %s2445_s21 = smov 8  }
  0x24   :  { %26 = dma.hbm_to_vmem [thread:$0]  %s2900_s0, 4096, %s21_s12, [#allocation3], %s2444_s1, %s2444_s1, %s2445_s21  }
  0x25   :  { %s2446_s24 = smov [#allocation7]   ;;  %s2447_s26 = smov [#allocation8]  }
  0x26   :  { %s44_s25 = sshll.u32 %s2446_s24, 4  ;;  %s58_s27 = sshll.u32 %s2447_s26, 4  ;;  %s45_s25 = int_to_ptr.vmem [resolvable:$true] %s44_s25  ;;  %s2516_s27 = int_to_ptr.vmem [resolvable:$true] %s58_s27 }
  0x27   :  { %s2366_s30 = scalar_lea.hbm %s2902_s2, 2048 }
  0x28   :  { %p2367_p2 = scmp.ne.s32.totalorder %s2902_s2, %s2366_s30  ;;  %p2370_p3 = scmp.lt.u32.totalorder %s2366_s30, %s2902_s2 }
  0x2a   :  { %p2372_p4 = pnand %p2370_p3, %p2367_p2 }
  0x2c   :  { %2375 = shalt.err (!%p2372_p4)
}
  0x2d   :  { %s2376_s0 = scalar_lea.vmem %s45_s25, 2048  ;;  %p2381_p6 = scmp.lt.s32.totalorder %s45_s25, %s45_s25 }
  0x2e   :  { %p2377_p5 = scmp.ne.s32.totalorder %s45_s25, %s2376_s0  ;;  %p2382_p7 = scmp.lt.s32.totalorder %s2376_s0, %s2376_s0 }
  0x30   :  { %p2383_p8 = por %p2382_p7, %p2381_p6 }
  0x32   :  { %p2384_p9 = pnand %p2383_p8, %p2377_p5 }
  0x34   :  { %2387 = shalt.err (!%p2384_p9)
}
  0x35   :  { %50 = dma.hbm_to_vmem [thread:$0]  %s2902_s2, 2048, %s45_s25, [#allocation6], %s2444_s1, %s2444_s1, %s2445_s21  }
  0x36   :  { %s2388_s17 = scalar_lea.hbm %s2904_s4, 2048 }
  0x37   :  { %p2389_p10 = scmp.ne.s32.totalorder %s2904_s4, %s2388_s17  ;;  %p2392_p11 = scmp.lt.u32.totalorder %s2388_s17, %s2904_s4 }
  0x39   :  { %p2394_p12 = pnand %p2392_p11, %p2389_p10 }
  0x3b   :  { %2397 = shalt.err (!%p2394_p12)
}
  0x3c   :  { %s2398_s23 = scalar_lea.vmem %s2516_s27, 2048  ;;  %p2403_p0 = scmp.lt.s32.totalorder %s2516_s27, %s2516_s27 }
  0x3d   :  { %p2399_p13 = scmp.ne.s32.totalorder %s2516_s27, %s2398_s23  ;;  %p2404_p1 = scmp.lt.s32.totalorder %s2398_s23, %s2398_s23 }
  0x3f   :  { %p2405_p2 = por %p2404_p1, %p2403_p0 }
  0x41   :  { %p2406_p3 = pnand %p2405_p2, %p2399_p13 }
  0x43   :  { %2409 = shalt.err (!%p2406_p3)
}
  0x44   :  { %64 = dma.hbm_to_vmem [thread:$0]  %s2904_s4, 2048, %s2516_s27, [#allocation9], %s2444_s1, %s2444_s1, %s2445_s21  }
  0x45   :  { %2432 = dma.done.wait [#allocation3], 4096  }
  0x46   :  { %2433 = vsyncadd [#allocation3], 4294963200 }
  0x47   :  { %2434 = dma.done.wait [#allocation6], 4096  }
  0x48   :  { %2435 = vsyncadd [#allocation6], 4294963200 }
  0x49   :  { %2436 = dma.done.wait [#allocation9], 2048  }
  0x4a   :  { %2437 = vsyncadd [#allocation9], 4294965248  ;;  %v2448_v0 = vmov 0   ;;  %v2210_v1 = vld [vmem:[#allocation7 + $0x4] ss:$8 sps:$4 sm:$0xff]   ;;  %v2236_v19 = vld [vmem:[#allocation5 + $0x10] sm:$0xff]  }
  0x4b   :  { %369 = vmatprep.mubr.bf16.mxu0 %v2448_v0  ;;  %v2212_v2 = vld [vmem:[#allocation7] ss:$8 sps:$4 sm:$0xff]   ;;  %337 = vmatprep.subr.bf16.mxu0 %v2210_v1  ;;  %v2213_v3 = vld [vmem:[#allocation7 + $0x14] ss:$8 sps:$4 sm:$0xff]   ;;  %v2215_v4 = vld [vmem:[#allocation7 + $0x10] ss:$8 sps:$4 sm:$0xff]  }
  0x4c   :  { %338 = vmatpush1.bf16.msra.mxu0 %v2212_v2  ;;  %v2216_v5 = vld [vmem:[#allocation7 + $0x24] ss:$8 sps:$4 sm:$0xff]   ;;  %v2218_v6 = vld [vmem:[#allocation7 + $0x20] ss:$8 sps:$4 sm:$0xff]   ;;  %v2219_v7 = vld [vmem:[#allocation7 + $0x34] ss:$8 sps:$4 sm:$0xff]  }
  0x4d   :  { %339 = vmatprep.subr.bf16.mxu0 %v2213_v3  ;;  %v2221_v8 = vld [vmem:[#allocation7 + $0x30] ss:$8 sps:$4 sm:$0xff]   ;;  %v2222_v9 = vld [vmem:[#allocation7 + $0x44] ss:$8 sps:$4 sm:$0xff]   ;;  %v2224_v10 = vld [vmem:[#allocation7 + $0x40] ss:$8 sps:$4 sm:$0xff]  }
  0x4e   :  { %v2225_v11 = vld [vmem:[#allocation7 + $0x54] ss:$8 sps:$4 sm:$0xff]   ;;  %v2227_v12 = vld [vmem:[#allocation7 + $0x50] ss:$8 sps:$4 sm:$0xff]   ;;  %v2228_v13 = vld [vmem:[#allocation7 + $0x64] ss:$8 sps:$4 sm:$0xff]  }
  0x4f   :  { %v2230_v14 = vld [vmem:[#allocation7 + $0x60] ss:$8 sps:$4 sm:$0xff]   ;;  %v2231_v15 = vld [vmem:[#allocation7 + $0x74] ss:$8 sps:$4 sm:$0xff]   ;;  %v2233_v16 = vld [vmem:[#allocation7 + $0x70] ss:$8 sps:$4 sm:$0xff]  }
  0x50   :  { %340 = vmatpush1.bf16.msra.mxu0 %v2215_v4  ;;  %v2234_v17 = vld [vmem:[#allocation5] sm:$0xff]   ;;  %v2235_v18 = vld [vmem:[#allocation5 + $0x8] sm:$0xff]   ;;  %v2237_v20 = vld [vmem:[#allocation5 + $0x18] sm:$0xff]  }
  0x51   :  { %341 = vmatprep.subr.bf16.mxu0 %v2216_v5  ;;  %v2238_v21 = vld [vmem:[#allocation5 + $0x20] sm:$0xff]   ;;  %v2239_v22 = vld [vmem:[#allocation5 + $0x28] sm:$0xff]   ;;  %v2240_v23 = vld [vmem:[#allocation5 + $0x30] sm:$0xff]  }
  0x52   :  { %v2241_v24 = vld [vmem:[#allocation5 + $0x38] sm:$0xff]   ;;  %v2242_v25 = vld [vmem:[#allocation5 + $0x40] sm:$0xff]   ;;  %v2243_v26 = vld [vmem:[#allocation5 + $0x48] sm:$0xff]  }
  0x53   :  { %v2244_v27 = vld [vmem:[#allocation5 + $0x50] sm:$0xff]   ;;  %v2245_v28 = vld [vmem:[#allocation5 + $0x58] sm:$0xff]   ;;  %v2246_v29 = vld [vmem:[#allocation5 + $0x60] sm:$0xff]  }
  0x54   :  { %342 = vmatpush1.bf16.msra.mxu0 %v2218_v6  ;;  %v2247_v30 = vld [vmem:[#allocation5 + $0x68] sm:$0xff]   ;;  %v2248_v31 = vld [vmem:[#allocation5 + $0x70] sm:$0xff]   ;;  %v2249_v32 = vld [vmem:[#allocation5 + $0x78] sm:$0xff]  }
  0x55   :  { %343 = vmatprep.subr.bf16.mxu0 %v2219_v7  ;;  %v2570_v33 = vld [vmem:[#allocation2 + $0x4] ss:$8 sps:$4 sm:$0xff]   ;;  %v2253_v36 = vld [vmem:[#allocation8] ss:$8 sps:$4 sm:$0xff]   ;;  %v2258_v39 = vld [vmem:[#allocation8 + $0x14] ss:$8 sps:$4 sm:$0xff]  }
  0x56   :  { %738 = vmatprep.mubr.bf16.mxu1 %v2570_v33  ;;  %v2255_v37 = vld [vmem:[#allocation8 + $0x4] ss:$8 sps:$4 sm:$0xff]   ;;  %v2256_v42 = vld [vmem:[#allocation8 + $0x10] ss:$8 sps:$4 sm:$0xff]   ;;  %v2259_v45 = vld [vmem:[#allocation8 + $0x20] ss:$8 sps:$4 sm:$0xff]  }
  0x57   :  { %v2261_v43 = vld [vmem:[#allocation8 + $0x24] ss:$8 sps:$4 sm:$0xff]   ;;  %v2264_v47 = vld [vmem:[#allocation8 + $0x34] ss:$8 sps:$4 sm:$0xff]   ;;  %v2262_v51 = vld [vmem:[#allocation8 + $0x30] ss:$8 sps:$4 sm:$0xff]  }
  0x58   :  { %344 = vmatpush1.bf16.msra.mxu0 %v2221_v8  ;;  %v2267_v52 = vld [vmem:[#allocation8 + $0x44] ss:$8 sps:$4 sm:$0xff]   ;;  %v2265_v54 = vld [vmem:[#allocation8 + $0x40] ss:$8 sps:$4 sm:$0xff]  }
  0x59   :  { %345 = vmatprep.subr.bf16.mxu0 %v2222_v9 }
  0x5c   :  { %346 = vmatpush1.bf16.msra.mxu0 %v2224_v10 }
  0x5d   :  { %347 = vmatprep.subr.bf16.mxu0 %v2225_v11 }
  0x60   :  { %348 = vmatpush1.bf16.msra.mxu0 %v2227_v12 }
  0x61   :  { %349 = vmatprep.subr.bf16.mxu0 %v2228_v13 }
  0x64   :  { %350 = vmatpush1.bf16.msra.mxu0 %v2230_v14 }
  0x65   :  { %351 = vmatprep.subr.bf16.mxu0 %v2231_v15 }
  0x68   :  { %352 = vmatpush1.bf16.msra.mxu0 %v2233_v16 }
  0x69   :  { %1147 = vmatprep.subr.bf16.mxu0 %v2255_v37 }
  0x6b   :  { %370 = vmatmul.mubr.bf16.vlgmr.msra.gmra.mrb[0].mxu0 %v2234_v17 }
  0x6c   :  { %379 = vmatprep.mubr.bf16.mxu0 %v2448_v0  ;;  %1148 = vmatpush1.bf16.msra.mxu0 %v2253_v36 }
  0x6d   :  { %1149 = vmatprep.subr.bf16.mxu0 %v2258_v39 }
  0x70   :  { %1150 = vmatpush1.bf16.msra.mxu0 %v2256_v42 }
  0x71   :  { %1151 = vmatprep.subr.bf16.mxu0 %v2261_v43 }
  0x73   :  { %380 = vmatmul.mubr.bf16.gmra.mrb[4].mxu0 %v2235_v18 }
  0x74   :  { %389 = vmatprep.mubr.bf16.mxu0 %v2448_v0  ;;  %1152 = vmatpush1.bf16.msra.mxu0 %v2259_v45 }
  0x75   :  { %1153 = vmatprep.subr.bf16.mxu0 %v2264_v47 }
  0x78   :  { %1154 = vmatpush1.bf16.msra.mxu0 %v2262_v51 }
  0x79   :  { %1155 = vmatprep.subr.bf16.mxu0 %v2267_v52 }
  0x7b   :  { %390 = vmatmul.mubr.bf16.gmra.mrb[8].mxu0 %v2236_v19 }
  0x7c   :  { %399 = vmatprep.mubr.bf16.mxu0 %v2448_v0  ;;  %1156 = vmatpush1.bf16.msra.mxu0 %v2265_v54 }
  0x83   :  { %400 = vmatmul.mubr.bf16.gmra.mrb[12].mxu0 %v2237_v20 }
  0x84   :  { %409 = vmatprep.mubr.bf16.mxu0 %v2448_v0 }
  0x8b   :  { %410 = vmatmul.mubr.bf16.gmra.mrb[16].mxu0 %v2238_v21 }
  0x8c   :  { %419 = vmatprep.mubr.bf16.mxu0 %v2448_v0 }
  0x93   :  { %420 = vmatmul.mubr.bf16.gmra.mrb[20].mxu0 %v2239_v22 }
  0x94   :  { %429 = vmatprep.mubr.bf16.mxu0 %v2448_v0 }
  0x9b   :  { %430 = vmatmul.mubr.bf16.gmra.mrb[24].mxu0 %v2240_v23 }
  0x9c   :  { %439 = vmatprep.mubr.bf16.mxu0 %v2448_v0 }
  0xa3   :  { %440 = vmatmul.mubr.bf16.gmra.mrb[28].mxu0 %v2241_v24 }
  0xa4   :  { %449 = vmatprep.mubr.bf16.mxu0 %v2448_v0 }
  0xab   :  { %450 = vmatmul.mubr.bf16.gmra.mrb[32].mxu0 %v2242_v25 }
  0xac   :  { %459 = vmatprep.mubr.bf16.mxu0 %v2448_v0 }
  0xb3   :  { %460 = vmatmul.mubr.bf16.gmra.mrb[36].mxu0 %v2243_v26 }
  0xb4   :  { %469 = vmatprep.mubr.bf16.mxu0 %v2448_v0 }
  0xbb   :  { %470 = vmatmul.mubr.bf16.gmra.mrb[40].mxu0 %v2244_v27 }
  0xbc   :  { %479 = vmatprep.mubr.bf16.mxu0 %v2448_v0 }
  0xc3   :  { %480 = vmatmul.mubr.bf16.gmra.mrb[44].mxu0 %v2245_v28 }
  0xc4   :  { %489 = vmatprep.mubr.bf16.mxu0 %v2448_v0 }
  0xcb   :  { %490 = vmatmul.mubr.bf16.gmra.mrb[48].mxu0 %v2246_v29 }
  0xcc   :  { %499 = vmatprep.mubr.bf16.mxu0 %v2448_v0 }
  0xd3   :  { %500 = vmatmul.mubr.bf16.gmra.mrb[52].mxu0 %v2247_v30 }
  0xd4   :  { %509 = vmatprep.mubr.bf16.mxu0 %v2448_v0 }
  0xdb   :  { %510 = vmatmul.mubr.bf16.gmra.mrb[56].mxu0 %v2248_v31 }
  0xdc   :  { %519 = vmatprep.mubr.bf16.mxu0 %v2448_v0 }
  0xe3   :  { %520 = vmatmul.mubr.bf16.gmra.mrb[60].mxu0 %v2249_v32 }
  0xe4   :  { %1179 = vmatprep.mubr.bf16.mxu0 %v2448_v0 }
 0x13e   :  { %v2572_v34 = vpop.f32.mrb[0].mxu0 }
 0x13f   :  { %v2575_v35 = vpop.f32.mrb[1].mxu0 }
 0x140   :  { %v375_v38 = vpop.f32.mrb[2].mxu0 }
 0x141   :  { %v530_v40 = vpack.c.bf16 %v375_v38, %v2572_v34  ;;  %v2578_v41 = vpop.f32.mrb[3].mxu0 }
 0x146   :  { %v381_v44 = vpop.f32.mrb[4].mxu0 }
 0x147   :  { %v383_v46 = vpop.f32.mrb[5].mxu0 }
 0x148   :  { %v385_v48 = vpop.f32.mrb[6].mxu0 }
 0x149   :  { %v531_v49 = vpack.c.bf16 %v385_v48, %v381_v44  ;;  %v387_v50 = vpop.f32.mrb[7].mxu0 }
 0x14e   :  { %v391_v53 = vpop.f32.mrb[8].mxu0 }
 0x14f   :  { %v393_v55 = vpop.f32.mrb[9].mxu0 }
 0x150   :  { %v395_v56 = vpop.f32.mrb[10].mxu0 }
 0x151   :  { %v532_v57 = vpack.c.bf16 %v395_v56, %v391_v53  ;;  %v397_v58 = vpop.f32.mrb[11].mxu0 }
 0x156   :  { %v401_v59 = vpop.f32.mrb[12].mxu0 }
 0x157   :  { %v403_v60 = vpop.f32.mrb[13].mxu0 }
 0x158   :  { %v405_v61 = vpop.f32.mrb[14].mxu0 }
 0x159   :  { %v533_v62 = vpack.c.bf16 %v405_v61, %v401_v59  ;;  %v407_v63 = vpop.f32.mrb[15].mxu0 }
 0x15e   :  { %v411_v1 = vpop.f32.mrb[16].mxu0 }
 0x15f   :  { %v413_v2 = vpop.f32.mrb[17].mxu0 }
 0x160   :  { %v415_v3 = vpop.f32.mrb[18].mxu0  ;;  %v2270_v2 = vld [vmem:[#allocation8 + $0x54] ss:$8 sps:$4 sm:$0xff]  }
 0x161   :  { %v534_v4 = vpack.c.bf16 %v415_v3, %v411_v1  ;;  %v417_v5 = vpop.f32.mrb[19].mxu0  ;;  %v2580_v1 = vld [vmem:[#allocation2] ss:$8 sps:$4 sm:$0xff]   ;;  %v2268_v3 = vld [vmem:[#allocation8 + $0x50] ss:$8 sps:$4 sm:$0xff]   ;;  %1157 = vmatprep.subr.bf16.mxu0 %v2270_v2 }
 0x162   :  { %1158 = vmatpush1.bf16.msra.mxu0 %v2268_v3  ;;  %v2271_v5 = vld [vmem:[#allocation8 + $0x60] ss:$8 sps:$4 sm:$0xff]  }
 0x166   :  { %v421_v6 = vpop.f32.mrb[20].mxu0 }
 0x167   :  { %v423_v7 = vpop.f32.mrb[21].mxu0 }
 0x168   :  { %v425_v8 = vpop.f32.mrb[22].mxu0  ;;  %v2274_v7 = vld [vmem:[#allocation8 + $0x70] ss:$8 sps:$4 sm:$0xff]  }
 0x169   :  { %v535_v9 = vpack.c.bf16 %v425_v8, %v421_v6  ;;  %v427_v10 = vpop.f32.mrb[23].mxu0  ;;  %v2276_v6 = vld [vmem:[#allocation8 + $0x74] ss:$8 sps:$4 sm:$0xff]  }
 0x16e   :  { %v431_v11 = vpop.f32.mrb[24].mxu0 }
 0x16f   :  { %v433_v12 = vpop.f32.mrb[25].mxu0 }
 0x170   :  { %v435_v13 = vpop.f32.mrb[26].mxu0  ;;  %v1798_v12 = vld [vmem:[%s2903_s3] ss:$0 sm:$0xff] }
 0x171   :  { %v536_v14 = vpack.c.bf16 %v435_v13, %v431_v11  ;;  %v437_v15 = vpop.f32.mrb[27].mxu0 }
 0x176   :  { %v441_v16 = vpop.f32.mrb[28].mxu0 }
 0x177   :  { %v443_v17 = vpop.f32.mrb[29].mxu0 }
 0x178   :  { %v445_v18 = vpop.f32.mrb[30].mxu0 }
 0x179   :  { %v537_v19 = vpack.c.bf16 %v445_v18, %v441_v16  ;;  %v447_v20 = vpop.f32.mrb[31].mxu0 }
 0x17e   :  { %v451_v21 = vpop.f32.mrb[32].mxu0 }
 0x17f   :  { %v453_v22 = vpop.f32.mrb[33].mxu0 }
 0x180   :  { %v455_v23 = vpop.f32.mrb[34].mxu0  ;;  %v2449_v22 = vmov 0.0|0.0  }
 0x181   :  { %v457_v24 = vpop.f32.mrb[35].mxu0  ;;  %v538_v25 = vpack.c.bf16 %v455_v23, %v451_v21  ;;  %v2606_v23 = vld [vmem:[#allocation2 + $0x24] ss:$8 sps:$4 sm:$0xff]  }
 0x182   :  { %v2608_v24 = vld [vmem:[#allocation2 + $0x20] ss:$8 sps:$4 sm:$0xff]  }
 0x183   :  { %1975 = vmatprep.subr.bf16.mxu1 %v538_v25  ;;  %v2613_v25 = vld [vmem:[#allocation2 + $0x34] ss:$8 sps:$4 sm:$0xff]  }
 0x184   :  { %1976 = vmatpush3.bf16.msra.mxu1 %v530_v40 }
 0x186   :  { %v461_v26 = vpop.f32.mrb[36].mxu0 }
 0x187   :  { %v463_v27 = vpop.f32.mrb[37].mxu0 }
 0x188   :  { %v465_v28 = vpop.f32.mrb[38].mxu0  ;;  %v2620_v27 = vld [vmem:[#allocation2 + $0x44] ss:$8 sps:$4 sm:$0xff]  }
 0x189   :  { %v539_v29 = vpack.c.bf16 %v465_v28, %v461_v26  ;;  %v467_v30 = vpop.f32.mrb[39].mxu0  ;;  %v2615_v26 = vld [vmem:[#allocation2 + $0x30] ss:$8 sps:$4 sm:$0xff]   ;;  %v2622_v28 = vld [vmem:[#allocation2 + $0x40] ss:$8 sps:$4 sm:$0xff]  }
 0x18a   :  { %v2629_v30 = vld [vmem:[#allocation2 + $0x50] ss:$8 sps:$4 sm:$0xff]  }
 0x18b   :  { %1977 = vmatprep.subr.bf16.mxu1 %v539_v29  ;;  %v2627_v29 = vld [vmem:[#allocation2 + $0x54] ss:$8 sps:$4 sm:$0xff]  }
 0x18c   :  { %1978 = vmatpush3.bf16.msra.mxu1 %v531_v49 }
 0x18e   :  { %v471_v31 = vpop.f32.mrb[40].mxu0 }
 0x18f   :  { %v473_v32 = vpop.f32.mrb[41].mxu0 }
 0x190   :  { %v475_v34 = vpop.f32.mrb[42].mxu0  ;;  %v2635_v32 = vld [vmem:[#allocation2 + $0x60] ss:$8 sps:$4 sm:$0xff]  }
 0x191   :  { %v540_v36 = vpack.c.bf16 %v475_v34, %v471_v31  ;;  %v477_v37 = vpop.f32.mrb[43].mxu0  ;;  %v2633_v31 = vld [vmem:[#allocation2 + $0x64] ss:$8 sps:$4 sm:$0xff]   ;;  %v2641_v34 = vld [vmem:[#allocation2 + $0x70] ss:$8 sps:$4 sm:$0xff]  }
 0x192   :  { %v2647_v37 = vld [vmem:[#allocation2 + $0x80] ss:$8 sps:$4 sm:$0xff]  }
 0x193   :  { %1979 = vmatprep.subr.bf16.mxu1 %v540_v36  ;;  %v2645_v36 = vld [vmem:[#allocation2 + $0x84] ss:$8 sps:$4 sm:$0xff]  }
 0x194   :  { %1980 = vmatpush3.bf16.msra.mxu1 %v532_v57 }
 0x196   :  { %v481_v38 = vpop.f32.mrb[44].mxu0 }
 0x197   :  { %v483_v39 = vpop.f32.mrb[45].mxu0 }
 0x198   :  { %v485_v42 = vpop.f32.mrb[46].mxu0  ;;  %v2653_v39 = vld [vmem:[#allocation2 + $0x90] ss:$8 sps:$4 sm:$0xff]  }
 0x199   :  { %v541_v43 = vpack.c.bf16 %v485_v42, %v481_v38  ;;  %v487_v44 = vpop.f32.mrb[47].mxu0  ;;  %v2651_v38 = vld [vmem:[#allocation2 + $0x94] ss:$8 sps:$4 sm:$0xff]   ;;  %v2657_v42 = vld [vmem:[#allocation2 + $0xa4] ss:$8 sps:$4 sm:$0xff]  }
 0x19a   :  { %v2663_v44 = vld [vmem:[#allocation2 + $0xb4] ss:$8 sps:$4 sm:$0xff]  }
 0x19b   :  { %1981 = vmatprep.subr.bf16.mxu1 %v541_v43  ;;  %v2659_v43 = vld [vmem:[#allocation2 + $0xa0] ss:$8 sps:$4 sm:$0xff]  }
 0x19c   :  { %1982 = vmatpush3.bf16.msra.mxu1 %v533_v62 }
 0x19e   :  { %v491_v40 = vpop.f32.mrb[48].mxu0 }
 0x19f   :  { %v493_v45 = vpop.f32.mrb[49].mxu0 }
 0x1a0   :  { %v495_v46 = vpop.f32.mrb[50].mxu0  ;;  %v2669_v45 = vld [vmem:[#allocation2 + $0xc4] ss:$8 sps:$4 sm:$0xff]  }
 0x1a1   :  { %v542_v47 = vpack.c.bf16 %v495_v46, %v491_v40  ;;  %v497_v48 = vpop.f32.mrb[51].mxu0  ;;  %v2665_v40 = vld [vmem:[#allocation2 + $0xb0] ss:$8 sps:$4 sm:$0xff]   ;;  %v2671_v46 = vld [vmem:[#allocation2 + $0xc0] ss:$8 sps:$4 sm:$0xff]  }
 0x1a2   :  { %v2677_v48 = vld [vmem:[#allocation2 + $0xd0] ss:$8 sps:$4 sm:$0xff]  }
 0x1a3   :  { %1983 = vmatprep.subr.bf16.mxu1 %v542_v47  ;;  %v2675_v47 = vld [vmem:[#allocation2 + $0xd4] ss:$8 sps:$4 sm:$0xff]  }
 0x1a4   :  { %1984 = vmatpush3.bf16.msra.mxu1 %v534_v4  ;;  %v2273_v4 = vld [vmem:[#allocation8 + $0x64] ss:$8 sps:$4 sm:$0xff]  }
 0x1a5   :  { %1159 = vmatprep.subr.bf16.mxu0 %v2273_v4 }
 0x1a6   :  { %v501_v49 = vpop.f32.mrb[52].mxu0  ;;  %1160 = vmatpush1.bf16.msra.mxu0 %v2271_v5 }
 0x1a7   :  { %v503_v50 = vpop.f32.mrb[53].mxu0  ;;  %1161 = vmatprep.subr.bf16.mxu0 %v2276_v6 }
 0x1a8   :  { %v505_v51 = vpop.f32.mrb[54].mxu0  ;;  %v2683_v50 = vld [vmem:[#allocation2 + $0xe0] ss:$8 sps:$4 sm:$0xff]  }
 0x1a9   :  { %v543_v52 = vpack.c.bf16 %v505_v51, %v501_v49  ;;  %v507_v53 = vpop.f32.mrb[55].mxu0  ;;  %v2681_v49 = vld [vmem:[#allocation2 + $0xe4] ss:$8 sps:$4 sm:$0xff]   ;;  %v2687_v51 = vld [vmem:[#allocation2 + $0xf4] ss:$8 sps:$4 sm:$0xff]  }
 0x1aa   :  { %1162 = vmatpush1.bf16.msra.mxu0 %v2274_v7 }
 0x1ab   :  { %1985 = vmatprep.subr.bf16.mxu1 %v543_v52  ;;  %v2689_v52 = vld [vmem:[#allocation2 + $0xf0] ss:$8 sps:$4 sm:$0xff]  }
 0x1ac   :  { %1986 = vmatpush3.bf16.msra.mxu1 %v535_v9 }
 0x1ae   :  { %v511_v54 = vpop.f32.mrb[56].mxu0 }
 0x1af   :  { %v513_v55 = vpop.f32.mrb[57].mxu0 }
 0x1b0   :  { %v515_v56 = vpop.f32.mrb[58].mxu0 }
 0x1b1   :  { %v544_v57 = vpack.c.bf16 %v515_v56, %v511_v54  ;;  %v517_v58 = vpop.f32.mrb[59].mxu0 }
 0x1b3   :  { %1987 = vmatprep.subr.bf16.mxu1 %v544_v57 }
 0x1b4   :  { %1988 = vmatpush3.bf16.msra.mxu1 %v536_v14 }
 0x1b6   :  { %v521_v59 = vpop.f32.mrb[60].mxu0 }
 0x1b7   :  { %v523_v60 = vpop.f32.mrb[61].mxu0 }
 0x1b8   :  { %v525_v61 = vpop.f32.mrb[62].mxu0 }
 0x1b9   :  { %v545_v62 = vpack.c.bf16 %v525_v61, %v521_v59  ;;  %v527_v63 = vpop.f32.mrb[63].mxu0 }
 0x1bb   :  { %1989 = vmatprep.subr.bf16.mxu1 %v545_v62 }
 0x1bc   :  { %1990 = vmatpush3.bf16.msra.mxu1 %v537_v19 }
 0x1bf   :  { %739 = vmatmul.mubr.bf16.vlgmr.msra.gmra.mrb[0].mxu1 %v2580_v1 }
 0x292   :  { %v1991_v8 = vpop.f32.mrb[0].mxu1 }
 0x293   :  { %v1992_v9 = vpop.f32.mrb[1].mxu1 }
 0x294   :  { %v1993_v10 = vadd.f32 %v1992_v9, %v1991_v8  ;;  %v1994_v11 = vpop.f32.mrb[2].mxu1 }
 0x295   :  { %v1995_v13 = vpop.f32.mrb[3].mxu1 }
 0x296   :  { %v741_v14 = vadd.f32 %v1993_v10, %v2575_v35  ;;  %v1996_v15 = vadd.f32 %v1995_v13, %v1994_v11  ;;  %v2599_v35 = vld [vmem:[#allocation2 + $0x14] ss:$8 sps:$4 sm:$0xff]  }
 0x297   :  { %746 = vmatprep.mubr.bf16.mxu1 %v2599_v35 }
 0x298   :  { %v873_v16 = vadd.f32 %v1798_v12, %v741_v14  ;;  %v744_v17 = vadd.f32 %v1996_v15, %v2578_v41  ;;  %v2601_v41 = vld [vmem:[#allocation2 + $0x10] ss:$8 sps:$4 sm:$0xff]  }
 0x299   :  { %747 = vmatmul.mubr.bf16.gmra.mrb[4].mxu1 %v2601_v41 }
 0x29a   :  { %v874_v18 = vadd.f32 %v1798_v12, %v744_v17  ;;  %v905_v19 = vmax.f32 %v873_v16, 0.0  ;;  %754 = vmatprep.mubr.bf16.mxu1 %v2606_v23 }
 0x29c   :  { %v906_v20 = vmax.f32 %v874_v18, 0.0 }
 0x29e   :  { %v1034_v21 = vpack.c.bf16 %v906_v20, %v905_v19 }
 0x2a0   :  { %1180 = vmatmul.mubr.bf16.vlgmr.msra.gmra.mrb[64].mxu0 %v1034_v21 }
 0x2a1   :  { %1189 = vmatprep.mubr.bf16.mxu0 %v2448_v0  ;;  %755 = vmatmul.mubr.bf16.gmra.mrb[8].mxu1 %v2608_v24 }
 0x2a2   :  { %762 = vmatprep.mubr.bf16.mxu1 %v2613_v25 }
 0x2a8   :  { %1190 = vmatmul.mubr.bf16.gmra.mrb[68].mxu0 %v2449_v22 }
 0x2a9   :  { %1199 = vmatprep.mubr.bf16.mxu0 %v2448_v0  ;;  %763 = vmatmul.mubr.bf16.gmra.mrb[12].mxu1 %v2615_v26 }
 0x2aa   :  { %770 = vmatprep.mubr.bf16.mxu1 %v2620_v27 }
 0x2b0   :  { %1200 = vmatmul.mubr.bf16.gmra.mrb[72].mxu0 %v2449_v22 }
 0x2b1   :  { %1209 = vmatprep.mubr.bf16.mxu0 %v2448_v0  ;;  %771 = vmatmul.mubr.bf16.gmra.mrb[16].mxu1 %v2622_v28 }
 0x2b2   :  { %778 = vmatprep.mubr.bf16.mxu1 %v2627_v29 }
 0x2b8   :  { %1210 = vmatmul.mubr.bf16.gmra.mrb[76].mxu0 %v2449_v22 }
 0x2b9   :  { %1219 = vmatprep.mubr.bf16.mxu0 %v2448_v0  ;;  %779 = vmatmul.mubr.bf16.gmra.mrb[20].mxu1 %v2629_v30 }
 0x2ba   :  { %786 = vmatprep.mubr.bf16.mxu1 %v2633_v31 }
 0x2c0   :  { %1220 = vmatmul.mubr.bf16.gmra.mrb[80].mxu0 %v2449_v22 }
 0x2c1   :  { %1229 = vmatprep.mubr.bf16.mxu0 %v2448_v0  ;;  %787 = vmatmul.mubr.bf16.gmra.mrb[24].mxu1 %v2635_v32 }
 0x2c8   :  { %1230 = vmatmul.mubr.bf16.gmra.mrb[84].mxu0 %v2449_v22 }
 0x2c9   :  { %1239 = vmatprep.mubr.bf16.mxu0 %v2448_v0 }
 0x2d0   :  { %1240 = vmatmul.mubr.bf16.gmra.mrb[88].mxu0 %v2449_v22 }
 0x2d1   :  { %1249 = vmatprep.mubr.bf16.mxu0 %v2448_v0 }
 0x2d8   :  { %1250 = vmatmul.mubr.bf16.gmra.mrb[92].mxu0 %v2449_v22 }
 0x2d9   :  { %1259 = vmatprep.mubr.bf16.mxu0 %v2448_v0 }
 0x2e0   :  { %1260 = vmatmul.mubr.bf16.gmra.mrb[96].mxu0 %v2449_v22 }
 0x2e1   :  { %1269 = vmatprep.mubr.bf16.mxu0 %v2448_v0 }
 0x2e8   :  { %1270 = vmatmul.mubr.bf16.gmra.mrb[100].mxu0 %v2449_v22 }
 0x2e9   :  { %1279 = vmatprep.mubr.bf16.mxu0 %v2448_v0 }
 0x2f0   :  { %1280 = vmatmul.mubr.bf16.gmra.mrb[104].mxu0 %v2449_v22 }
 0x2f1   :  { %1289 = vmatprep.mubr.bf16.mxu0 %v2448_v0 }
 0x2f8   :  { %1290 = vmatmul.mubr.bf16.gmra.mrb[108].mxu0 %v2449_v22 }
 0x2f9   :  { %1299 = vmatprep.mubr.bf16.mxu0 %v2448_v0 }
 0x300   :  { %1300 = vmatmul.mubr.bf16.gmra.mrb[112].mxu0 %v2449_v22 }
 0x301   :  { %1309 = vmatprep.mubr.bf16.mxu0 %v2448_v0 }
 0x308   :  { %1310 = vmatmul.mubr.bf16.gmra.mrb[116].mxu0 %v2449_v22 }
 0x309   :  { %1319 = vmatprep.mubr.bf16.mxu0 %v2448_v0 }
 0x310   :  { %1320 = vmatmul.mubr.bf16.gmra.mrb[120].mxu0 %v2449_v22 }
 0x311   :  { %1329 = vmatprep.mubr.bf16.mxu0 %v2448_v0  ;;  %v2639_v0 = vld [vmem:[#allocation2 + $0x74] ss:$8 sps:$4 sm:$0xff]  }
 0x312   :  { %794 = vmatprep.mubr.bf16.mxu1 %v2639_v0 }
 0x313   :  { %795 = vmatmul.mubr.bf16.gmra.mrb[28].mxu1 %v2641_v34 }
 0x314   :  { %802 = vmatprep.mubr.bf16.mxu1 %v2645_v36 }
 0x318   :  { %1330 = vmatmul.mubr.bf16.gmra.mrb[124].mxu0 %v2449_v22 }
 0x31b   :  { %803 = vmatmul.mubr.bf16.gmra.mrb[32].mxu1 %v2647_v37 }
 0x31c   :  { %810 = vmatprep.mubr.bf16.mxu1 %v2651_v38 }
 0x323   :  { %811 = vmatmul.mubr.bf16.gmra.mrb[36].mxu1 %v2653_v39 }
 0x324   :  { %818 = vmatprep.mubr.bf16.mxu1 %v2657_v42 }
 0x32b   :  { %819 = vmatmul.mubr.bf16.gmra.mrb[40].mxu1 %v2659_v43 }
 0x32c   :  { %826 = vmatprep.mubr.bf16.mxu1 %v2663_v44 }
 0x333   :  { %827 = vmatmul.mubr.bf16.gmra.mrb[44].mxu1 %v2665_v40 }
 0x334   :  { %834 = vmatprep.mubr.bf16.mxu1 %v2669_v45 }
 0x33b   :  { %835 = vmatmul.mubr.bf16.gmra.mrb[48].mxu1 %v2671_v46 }
 0x33c   :  { %842 = vmatprep.mubr.bf16.mxu1 %v2675_v47 }
 0x343   :  { %843 = vmatmul.mubr.bf16.gmra.mrb[52].mxu1 %v2677_v48 }
 0x344   :  { %850 = vmatprep.mubr.bf16.mxu1 %v2681_v49 }
 0x34b   :  { %851 = vmatmul.mubr.bf16.gmra.mrb[56].mxu1 %v2683_v50 }
 0x34c   :  { %858 = vmatprep.mubr.bf16.mxu1 %v2687_v51 }
 0x353   :  { %859 = vmatmul.mubr.bf16.gmra.mrb[60].mxu1 %v2689_v52 }
 0x354   :  { %1388 = vmatprep.mubr.bf16.mxu1 %v2570_v33 }
 0x373   :  { %v1181_v53 = vpop.f32.mrb[64].mxu0 }
 0x374   :  { %v2694_v54 = vpop.f32.mrb[65].mxu0 }
 0x375   :  { %v1185_v55 = vpop.f32.mrb[66].mxu0 }
 0x376   :  { %v1340_v56 = vpack.c.bf16 %v1185_v55, %v1181_v53  ;;  %v2696_v57 = vpop.f32.mrb[67].mxu0 }
 0x37b   :  { %v1191_v58 = vpop.f32.mrb[68].mxu0 }
 0x37c   :  { %v2698_v59 = vpop.f32.mrb[69].mxu0 }
 0x37d   :  { %v1195_v60 = vpop.f32.mrb[70].mxu0 }
 0x37e   :  { %v1341_v61 = vpack.c.bf16 %v1195_v60, %v1191_v58  ;;  %v2700_v62 = vpop.f32.mrb[71].mxu0 }
 0x383   :  { %v1201_v63 = vpop.f32.mrb[72].mxu0 }
 0x384   :  { %v2702_v2 = vpop.f32.mrb[73].mxu0 }
 0x385   :  { %v1205_v3 = vpop.f32.mrb[74].mxu0 }
 0x386   :  { %v1342_v4 = vpack.c.bf16 %v1205_v3, %v1201_v63  ;;  %v2704_v33 = vpop.f32.mrb[75].mxu0 }
 0x38b   :  { %v1211_v5 = vpop.f32.mrb[76].mxu0 }
 0x38c   :  { %v2706_v6 = vpop.f32.mrb[77].mxu0 }
 0x38d   :  { %v1215_v7 = vpop.f32.mrb[78].mxu0 }
 0x38e   :  { %v1343_v8 = vpack.c.bf16 %v1215_v7, %v1211_v5  ;;  %v2708_v9 = vpop.f32.mrb[79].mxu0 }
 0x393   :  { %v1221_v10 = vpop.f32.mrb[80].mxu0 }
 0x394   :  { %v2710_v11 = vpop.f32.mrb[81].mxu0 }
 0x395   :  { %2907 = vst [vmem:[#allocation15_spill] sm:$0xff] %v2710_v11  ;;  %v1225_v12 = vpop.f32.mrb[82].mxu0 }
 0x396   :  { %v1344_v13 = vpack.c.bf16 %v1225_v12, %v1221_v10  ;;  %v2712_v14 = vpop.f32.mrb[83].mxu0 }
 0x397   :  { %2908 = vst [vmem:[#allocation16_spill] sm:$0xff] %v2712_v14 }
 0x39b   :  { %v2714_v15 = vpop.f32.mrb[84].mxu0 }
 0x39c   :  { %v2716_v16 = vpop.f32.mrb[85].mxu0 }
 0x39d   :  { %2909 = vst [vmem:[#allocation17_spill] sm:$0xff] %v2716_v16  ;;  %v2718_v17 = vpop.f32.mrb[86].mxu0 }
 0x39e   :  { %v2722_v19 = vpop.f32.mrb[87].mxu0 }
 0x39f   :  { %2910 = vst [vmem:[#allocation18_spill] sm:$0xff] %v2722_v19 }
 0x3a3   :  { %v2724_v20 = vpop.f32.mrb[88].mxu0 }
 0x3a4   :  { %v2726_v21 = vpop.f32.mrb[89].mxu0 }
 0x3a5   :  { %2911 = vst [vmem:[#allocation19_spill] sm:$0xff] %v2726_v21  ;;  %v2728_v22 = vpop.f32.mrb[90].mxu0 }
 0x3a6   :  { %v2732_v55 = vpop.f32.mrb[91].mxu0 }
 0x3a7   :  { %2912 = vst [vmem:[#allocation20_spill] sm:$0xff] %v2732_v55 }
 0x3ab   :  { %v2734_v58 = vpop.f32.mrb[92].mxu0 }
 0x3ac   :  { %v2736_v60 = vpop.f32.mrb[93].mxu0 }
 0x3ad   :  { %2913 = vst [vmem:[#allocation21_spill] sm:$0xff] %v2736_v60  ;;  %v2738_v63 = vpop.f32.mrb[94].mxu0 }
 0x3ae   :  { %v2742_v5 = vpop.f32.mrb[95].mxu0 }
 0x3af   :  { %2914 = vst [vmem:[#allocation22_spill] sm:$0xff] %v2742_v5 }
 0x3b3   :  { %v1261_v7 = vpop.f32.mrb[96].mxu0 }
 0x3b4   :  { %v2744_v10 = vpop.f32.mrb[97].mxu0 }
 0x3b5   :  { %2915 = vst [vmem:[#allocation23_spill] sm:$0xff] %v2744_v10  ;;  %v1265_v12 = vpop.f32.mrb[98].mxu0 }
 0x3b6   :  { %v1348_v18 = vpack.c.bf16 %v1265_v12, %v1261_v7  ;;  %v2746_v21 = vpop.f32.mrb[99].mxu0  ;;  %v1997_v7 = vpop.f32.mrb[4].mxu1 }
 0x3b8   :  { %2087 = vmatprep.subr.bf16.mxu1 %v1348_v18 }
 0x3b9   :  { %2088 = vmatpush3.bf16.msra.mxu1 %v1340_v56 }
 0x3bb   :  { %v1271_v53 = vpop.f32.mrb[100].mxu0 }
 0x3bc   :  { %v2748_v55 = vpop.f32.mrb[101].mxu0 }
 0x3bd   :  { %2916 = vst [vmem:[#allocation24_spill] sm:$0xff] %v2748_v55  ;;  %v1275_v60 = vpop.f32.mrb[102].mxu0  ;;  %v1998_v55 = vpop.f32.mrb[5].mxu1 }
 0x3be   :  { %v1349_v19 = vpack.c.bf16 %v1275_v60, %v1271_v53  ;;  %v2750_v16 = vpop.f32.mrb[103].mxu0 }
 0x3bf   :  { %2917 = vst [vmem:[#allocation25_spill] sm:$0xff] %v2750_v16 }
 0x3c0   :  { %2089 = vmatprep.subr.bf16.mxu1 %v1349_v19  ;;  %v2000_v19 = vpop.f32.mrb[6].mxu1 }
 0x3c1   :  { %2090 = vmatpush3.bf16.msra.mxu1 %v1341_v61  ;;  %v2001_v61 = vpop.f32.mrb[7].mxu1 }
 0x3c3   :  { %v1281_v3 = vpop.f32.mrb[104].mxu0 }
 0x3c4   :  { %v2752_v5 = vpop.f32.mrb[105].mxu0 }
 0x3c5   :  { %2918 = vst [vmem:[#allocation26_spill] sm:$0xff] %v2752_v5  ;;  %v1285_v14 = vpop.f32.mrb[106].mxu0 }
 0x3c6   :  { %v1350_v10 = vpack.c.bf16 %v1285_v14, %v1281_v3  ;;  %v2754_v11 = vpop.f32.mrb[107].mxu0  ;;  %v2003_v14 = vpop.f32.mrb[8].mxu1 }
 0x3c7   :  { %2919 = vst [vmem:[#allocation27_spill] sm:$0xff] %v2754_v11 }
 0x3c8   :  { %2091 = vmatprep.subr.bf16.mxu1 %v1350_v10  ;;  %v2004_v10 = vpop.f32.mrb[9].mxu1 }
 0x3c9   :  { %2092 = vmatpush3.bf16.msra.mxu1 %v1342_v4 }
 0x3cb   :  { %v1291_v18 = vpop.f32.mrb[108].mxu0 }
 0x3cc   :  { %v2756_v56 = vpop.f32.mrb[109].mxu0 }
 0x3cd   :  { %2920 = vst [vmem:[#allocation28_spill] sm:$0xff] %v2756_v56  ;;  %v1295_v12 = vpop.f32.mrb[110].mxu0  ;;  %v2006_v56 = vpop.f32.mrb[10].mxu1 }
 0x3ce   :  { %v1351_v53 = vpack.c.bf16 %v1295_v12, %v1291_v18  ;;  %v2758_v60 = vpop.f32.mrb[111].mxu0  ;;  %v2007_v7 = vpop.f32.mrb[11].mxu1 }
 0x3cf   :  { %v2009_v12 = vpop.f32.mrb[12].mxu1 }
 0x3d0   :  { %2093 = vmatprep.subr.bf16.mxu1 %v1351_v53  ;;  %v2010_v53 = vpop.f32.mrb[13].mxu1 }
 0x3d1   :  { %2094 = vmatpush3.bf16.msra.mxu1 %v1343_v8 }
 0x3d3   :  { %v1301_v5 = vpop.f32.mrb[112].mxu0 }
 0x3d4   :  { %v2760_v16 = vpop.f32.mrb[113].mxu0 }
 0x3d5   :  { %2921 = vst [vmem:[#allocation29_spill] sm:$0xff] %v2760_v16  ;;  %v1305_v3 = vpop.f32.mrb[114].mxu0  ;;  %v2012_v16 = vpop.f32.mrb[14].mxu1 }
 0x3d6   :  { %v1352_v4 = vpack.c.bf16 %v1305_v3, %v1301_v5  ;;  %v2762_v11 = vpop.f32.mrb[115].mxu0  ;;  %v2013_v14 = vpop.f32.mrb[15].mxu1  ;;  %v2922_v5 = vpack.c.bf16 %v2718_v17, %v2714_v15  ;;  %v2923_v16 = vpack.c.bf16 %v2728_v22, %v2724_v20 }
 0x3d8   :  { %2095 = vmatprep.subr.bf16.mxu1 %v1352_v4 }
 0x3d9   :  { %2096 = vmatpush3.bf16.msra.mxu1 %v1344_v13  ;;  %v2015_v13 = vpop.f32.mrb[16].mxu1 }
 0x3da   :  { %v2016_v4 = vpop.f32.mrb[17].mxu1 }
 0x3db   :  { %v1311_v55 = vpop.f32.mrb[116].mxu0  ;;  %v2018_v53 = vpop.f32.mrb[18].mxu1 }
 0x3dc   :  { %v2764_v18 = vpop.f32.mrb[117].mxu0 }
 0x3dd   :  { %v1315_v19 = vpop.f32.mrb[118].mxu0 }
 0x3de   :  { %v1353_v8 = vpack.c.bf16 %v1315_v19, %v1311_v55  ;;  %v2766_v61 = vpop.f32.mrb[119].mxu0  ;;  %v2019_v55 = vpop.f32.mrb[19].mxu1 }
 0x3df   :  { %v2021_v15 = vpop.f32.mrb[20].mxu1 }
 0x3e0   :  { %2097 = vmatprep.subr.bf16.mxu1 %v1353_v8  ;;  %v2022_v14 = vpop.f32.mrb[21].mxu1 }
 0x3e1   :  { %2098 = vmatpush3.bf16.msra.mxu1 %v2922_v5  ;;  %v2024_v4 = vpop.f32.mrb[22].mxu1 }
 0x3e3   :  { %v1321_v56 = vpop.f32.mrb[120].mxu0 }
 0x3e4   :  { %v2771_v3 = vpop.f32.mrb[121].mxu0 }
 0x3e5   :  { %v1325_v10 = vpop.f32.mrb[122].mxu0 }
 0x3e6   :  { %v1354_v7 = vpack.c.bf16 %v1325_v10, %v1321_v56  ;;  %v2773_v12 = vpop.f32.mrb[123].mxu0  ;;  %v2025_v56 = vpop.f32.mrb[23].mxu1  ;;  %v2924_v10 = vpack.c.bf16 %v2738_v63, %v2734_v58 }
 0x3e7   :  { %v2027_v20 = vpop.f32.mrb[24].mxu1 }
 0x3e8   :  { %2099 = vmatprep.subr.bf16.mxu1 %v1354_v7  ;;  %v2028_v22 = vpop.f32.mrb[25].mxu1 }
 0x3e9   :  { %2100 = vmatpush3.bf16.msra.mxu1 %v2923_v16  ;;  %v2030_v7 = vpop.f32.mrb[26].mxu1 }
 0x3ea   :  { %v2031_v53 = vpop.f32.mrb[27].mxu1 }
 0x3eb   :  { %v1331_v19 = vpop.f32.mrb[124].mxu0  ;;  %v2033_v55 = vpop.f32.mrb[28].mxu1 }
 0x3ec   :  { %v2778_v8 = vpop.f32.mrb[125].mxu0  ;;  %v2034_v16 = vpop.f32.mrb[29].mxu1 }
 0x3ed   :  { %v1335_v17 = vpop.f32.mrb[126].mxu0 }
 0x3ee   :  { %v1355_v5 = vpack.c.bf16 %v1335_v17, %v1331_v19  ;;  %v2780_v13 = vpop.f32.mrb[127].mxu0  ;;  %v2036_v19 = vpop.f32.mrb[30].mxu1 }
 0x3ef   :  { %v2037_v15 = vpop.f32.mrb[31].mxu1 }
 0x3f0   :  { %2101 = vmatprep.subr.bf16.mxu1 %v1355_v5  ;;  %v2039_v58 = vpop.f32.mrb[32].mxu1 }
 0x3f1   :  { %2102 = vmatpush3.bf16.msra.mxu1 %v2924_v10 }
 0x3f4   :  { %1389 = vmatmul.mubr.bf16.vlgmr.msra.gmra.mrb[64].mxu1 %v2580_v1  ;;  %v2040_v1 = vpop.f32.mrb[33].mxu1 }
 0x3f5   :  { %1396 = vmatprep.mubr.bf16.mxu1 %v2599_v35  ;;  %v2042_v63 = vpop.f32.mrb[34].mxu1 }
 0x3f6   :  { %v2043_v17 = vpop.f32.mrb[35].mxu1 }
 0x3f7   :  { %v2045_v35 = vpop.f32.mrb[36].mxu1 }
 0x3fc   :  { %1397 = vmatmul.mubr.bf16.gmra.mrb[68].mxu1 %v2601_v41  ;;  %v2046_v41 = vpop.f32.mrb[37].mxu1 }
 0x3fd   :  { %1404 = vmatprep.mubr.bf16.mxu1 %v2606_v23  ;;  %v2048_v14 = vpop.f32.mrb[38].mxu1 }
 0x3fe   :  { %v2049_v5 = vpop.f32.mrb[39].mxu1 }
 0x3ff   :  { %v2051_v23 = vpop.f32.mrb[40].mxu1 }
 0x404   :  { %1405 = vmatmul.mubr.bf16.gmra.mrb[72].mxu1 %v2608_v24  ;;  %v2052_v24 = vpop.f32.mrb[41].mxu1 }
 0x405   :  { %1412 = vmatprep.mubr.bf16.mxu1 %v2613_v25  ;;  %v2054_v4 = vpop.f32.mrb[42].mxu1 }
 0x406   :  { %v2055_v56 = vpop.f32.mrb[43].mxu1 }
 0x407   :  { %v2057_v25 = vpop.f32.mrb[44].mxu1 }
 0x40c   :  { %1413 = vmatmul.mubr.bf16.gmra.mrb[76].mxu1 %v2615_v26  ;;  %v2058_v26 = vpop.f32.mrb[45].mxu1 }
 0x40d   :  { %1420 = vmatprep.mubr.bf16.mxu1 %v2620_v27  ;;  %v2060_v10 = vpop.f32.mrb[46].mxu1 }
 0x40e   :  { %v2061_v20 = vpop.f32.mrb[47].mxu1 }
 0x40f   :  { %v2063_v27 = vpop.f32.mrb[48].mxu1 }
 0x414   :  { %1421 = vmatmul.mubr.bf16.gmra.mrb[80].mxu1 %v2622_v28  ;;  %v2064_v28 = vpop.f32.mrb[49].mxu1 }
 0x415   :  { %1428 = vmatprep.mubr.bf16.mxu1 %v2627_v29  ;;  %v2066_v22 = vpop.f32.mrb[50].mxu1 }
 0x416   :  { %v2067_v7 = vpop.f32.mrb[51].mxu1 }
 0x417   :  { %v2069_v29 = vpop.f32.mrb[52].mxu1 }
 0x41c   :  { %1429 = vmatmul.mubr.bf16.gmra.mrb[84].mxu1 %v2629_v30  ;;  %v2070_v30 = vpop.f32.mrb[53].mxu1 }
 0x41d   :  { %1436 = vmatprep.mubr.bf16.mxu1 %v2633_v31  ;;  %v2072_v53 = vpop.f32.mrb[54].mxu1 }
 0x41e   :  { %v2073_v55 = vpop.f32.mrb[55].mxu1 }
 0x41f   :  { %v2075_v31 = vpop.f32.mrb[56].mxu1 }
 0x424   :  { %1437 = vmatmul.mubr.bf16.gmra.mrb[88].mxu1 %v2635_v32  ;;  %v2076_v32 = vpop.f32.mrb[57].mxu1 }
 0x425   :  { %1444 = vmatprep.mubr.bf16.mxu1 %v2639_v0  ;;  %v2078_v16 = vpop.f32.mrb[58].mxu1 }
 0x426   :  { %v2079_v19 = vpop.f32.mrb[59].mxu1 }
 0x427   :  { %v2081_v0 = vpop.f32.mrb[60].mxu1 }
 0x42c   :  { %1445 = vmatmul.mubr.bf16.gmra.mrb[92].mxu1 %v2641_v34  ;;  %v2082_v34 = vpop.f32.mrb[61].mxu1 }
 0x42d   :  { %1452 = vmatprep.mubr.bf16.mxu1 %v2645_v36  ;;  %v2084_v15 = vpop.f32.mrb[62].mxu1  ;;  %v2925_v34 = vld [vmem:[#allocation15_spill] sm:$0xff] }
 0x42e   :  { %v2085_v58 = vpop.f32.mrb[63].mxu1 }
 0x434   :  { %1453 = vmatmul.mubr.bf16.gmra.mrb[96].mxu1 %v2647_v37 }
 0x435   :  { %1460 = vmatprep.mubr.bf16.mxu1 %v2651_v38 }
 0x43c   :  { %1461 = vmatmul.mubr.bf16.gmra.mrb[100].mxu1 %v2653_v39 }
 0x43d   :  { %1468 = vmatprep.mubr.bf16.mxu1 %v2657_v42 }
 0x444   :  { %1469 = vmatmul.mubr.bf16.gmra.mrb[104].mxu1 %v2659_v43 }
 0x445   :  { %1476 = vmatprep.mubr.bf16.mxu1 %v2663_v44 }
 0x44c   :  { %1477 = vmatmul.mubr.bf16.gmra.mrb[108].mxu1 %v2665_v40  ;;  %v2820_v40 = vld [vmem:[%s2905_s5] ss:$0 sm:$0xff]  ;;  %s2450_s5 = smov [#allocation10]  }
 0x44d   :  { %1484 = vmatprep.mubr.bf16.mxu1 %v2669_v45  ;;  %s1720_s25 = sshll.u32 %s2450_s5, 4  ;;  %s1721_s25 = int_to_ptr.vmem [resolvable:$true] %s1720_s25 }
 0x44e   :  { %s2410_s26 = scalar_lea.vmem %s1721_s25, 2048  ;;  %p2415_p5 = scmp.lt.s32.totalorder %s1721_s25, %s1721_s25 }
 0x44f   :  { %p2411_p4 = scmp.ne.s32.totalorder %s1721_s25, %s2410_s26  ;;  %p2416_p6 = scmp.lt.s32.totalorder %s2410_s26, %s2410_s26 }
 0x451   :  { %p2417_p7 = por %p2416_p6, %p2415_p5 }
 0x453   :  { %p2418_p8 = pnand %p2417_p7, %p2411_p4 }
 0x454   :  { %1485 = vmatmul.mubr.bf16.gmra.mrb[112].mxu1 %v2671_v46 }
 0x455   :  { %1492 = vmatprep.mubr.bf16.mxu1 %v2675_v47 }
 0x45c   :  { %1493 = vmatmul.mubr.bf16.gmra.mrb[116].mxu1 %v2677_v48 }
 0x45d   :  { %1500 = vmatprep.mubr.bf16.mxu1 %v2681_v49 }
 0x464   :  { %1501 = vmatmul.mubr.bf16.gmra.mrb[120].mxu1 %v2683_v50 }
 0x465   :  { %1508 = vmatprep.mubr.bf16.mxu1 %v2687_v51 }
 0x46c   :  { %1509 = vmatmul.mubr.bf16.gmra.mrb[124].mxu1 %v2689_v52 }
 0x4c7   :  { %v2103_v36 = vpop.f32.mrb[64].mxu1 }
 0x4c8   :  { %v2104_v37 = vpop.f32.mrb[65].mxu1 }
 0x4c9   :  { %v2105_v38 = vadd.f32 %v2104_v37, %v2103_v36  ;;  %v2106_v39 = vpop.f32.mrb[66].mxu1  ;;  %v2926_v36 = vld [vmem:[#allocation16_spill] sm:$0xff] }
 0x4ca   :  { %v2107_v42 = vpop.f32.mrb[67].mxu1 }
 0x4cb   :  { %v1391_v43 = vadd.f32 %v2105_v38, %v2694_v54  ;;  %v2108_v44 = vadd.f32 %v2107_v42, %v2106_v39 }
 0x4cd   :  { %v1394_v45 = vadd.f32 %v2108_v44, %v2696_v57  ;;  %v1523_v46 = vadd.f32 %v2820_v40, %v1391_v43 }
 0x4cf   :  { %v1524_v47 = vadd.f32 %v2820_v40, %v1394_v45  ;;  %v2109_v48 = vpop.f32.mrb[68].mxu1 }
 0x4d0   :  { %v2110_v49 = vpop.f32.mrb[69].mxu1 }
 0x4d1   :  { %v1883_v50 = vpack.c.bf16 %v1524_v47, %v1523_v46  ;;  %v2111_v51 = vadd.f32 %v2110_v49, %v2109_v48  ;;  %v2112_v52 = vpop.f32.mrb[70].mxu1  ;;  %v2927_v46 = vld [vmem:[#allocation17_spill] sm:$0xff]  ;;  %v2928_v49 = vld [vmem:[#allocation18_spill] sm:$0xff] }
 0x4d2   :  { %v2113_v1 = vpop.f32.mrb[71].mxu1 }
 0x4d3   :  { %1884 = vst [vmem:[#allocation10] sm:$0xff] %v1883_v50   ;;  %v1399_v54 = vadd.f32 %v2111_v51, %v2698_v59  ;;  %v2114_v63 = vadd.f32 %v2113_v1, %v2112_v52 }
 0x4d5   :  { %v1402_v17 = vadd.f32 %v2114_v63, %v2700_v62  ;;  %v1525_v35 = vadd.f32 %v2820_v40, %v1399_v54 }
 0x4d7   :  { %v1526_v57 = vadd.f32 %v2820_v40, %v1402_v17  ;;  %v2115_v41 = vpop.f32.mrb[72].mxu1 }
 0x4d8   :  { %v2116_v14 = vpop.f32.mrb[73].mxu1 }
 0x4d9   :  { %v1888_v5 = vpack.c.bf16 %v1526_v57, %v1525_v35  ;;  %v2117_v23 = vadd.f32 %v2116_v14, %v2115_v41  ;;  %v2118_v24 = vpop.f32.mrb[74].mxu1  ;;  %v2929_v41 = vld [vmem:[#allocation19_spill] sm:$0xff] }
 0x4da   :  { %v2119_v4 = vpop.f32.mrb[75].mxu1 }
 0x4db   :  { %1960 = vst [vmem:[#allocation10 + $0x8] sm:$0xff] %v1888_v5   ;;  %v1407_v56 = vadd.f32 %v2117_v23, %v2702_v2  ;;  %v2120_v25 = vadd.f32 %v2119_v4, %v2118_v24  ;;  %v2930_v23 = vld [vmem:[#allocation20_spill] sm:$0xff] }
 0x4dd   :  { %v1410_v26 = vadd.f32 %v2120_v25, %v2704_v33  ;;  %v1527_v59 = vadd.f32 %v2820_v40, %v1407_v56 }
 0x4df   :  { %v1528_v62 = vadd.f32 %v2820_v40, %v1410_v26  ;;  %v2121_v10 = vpop.f32.mrb[76].mxu1 }
 0x4e0   :  { %v2122_v20 = vpop.f32.mrb[77].mxu1 }
 0x4e1   :  { %v1893_v27 = vpack.c.bf16 %v1528_v62, %v1527_v59  ;;  %v2123_v28 = vadd.f32 %v2122_v20, %v2121_v10  ;;  %v2124_v22 = vpop.f32.mrb[78].mxu1 }
 0x4e2   :  { %v2125_v7 = vpop.f32.mrb[79].mxu1 }
 0x4e3   :  { %1961 = vst [vmem:[#allocation10 + $0x10] sm:$0xff] %v1893_v27   ;;  %v1415_v29 = vadd.f32 %v2123_v28, %v2706_v6  ;;  %v2126_v30 = vadd.f32 %v2125_v7, %v2124_v22  ;;  %v2931_v27 = vld [vmem:[#allocation21_spill] sm:$0xff]  ;;  %v2932_v7 = vld [vmem:[#allocation22_spill] sm:$0xff] }
 0x4e5   :  { %v1418_v53 = vadd.f32 %v2126_v30, %v2708_v9  ;;  %v1529_v2 = vadd.f32 %v2820_v40, %v1415_v29 }
 0x4e7   :  { %v1530_v33 = vadd.f32 %v2820_v40, %v1418_v53  ;;  %v2127_v55 = vpop.f32.mrb[80].mxu1 }
 0x4e8   :  { %v2128_v31 = vpop.f32.mrb[81].mxu1 }
 0x4e9   :  { %v1898_v32 = vpack.c.bf16 %v1530_v33, %v1529_v2  ;;  %v2129_v16 = vadd.f32 %v2128_v31, %v2127_v55  ;;  %v2130_v19 = vpop.f32.mrb[82].mxu1 }
 0x4ea   :  { %v2131_v0 = vpop.f32.mrb[83].mxu1 }
 0x4eb   :  { %1962 = vst [vmem:[#allocation10 + $0x18] sm:$0xff] %v1898_v32   ;;  %v1423_v15 = vadd.f32 %v2129_v16, %v2925_v34  ;;  %v2132_v58 = vadd.f32 %v2131_v0, %v2130_v19  ;;  %v2933_v19 = vld [vmem:[#allocation23_spill] sm:$0xff] }
 0x4ed   :  { %v1426_v37 = vadd.f32 %v2132_v58, %v2926_v36  ;;  %v1531_v6 = vadd.f32 %v2820_v40, %v1423_v15 }
 0x4ef   :  { %v1532_v9 = vadd.f32 %v2820_v40, %v1426_v37  ;;  %v2133_v38 = vpop.f32.mrb[84].mxu1 }
 0x4f0   :  { %v2134_v39 = vpop.f32.mrb[85].mxu1 }
 0x4f1   :  { %v1903_v42 = vpack.c.bf16 %v1532_v9, %v1531_v6  ;;  %v2135_v43 = vadd.f32 %v2134_v39, %v2133_v38  ;;  %v2136_v44 = vpop.f32.mrb[86].mxu1 }
 0x4f2   :  { %v2137_v45 = vpop.f32.mrb[87].mxu1 }
 0x4f3   :  { %1963 = vst [vmem:[#allocation10 + $0x20] sm:$0xff] %v1903_v42   ;;  %v1431_v47 = vadd.f32 %v2135_v43, %v2927_v46  ;;  %v2138_v48 = vadd.f32 %v2137_v45, %v2136_v44  ;;  %v2934_v43 = vld [vmem:[#allocation24_spill] sm:$0xff]  ;;  %v2935_v46 = vld [vmem:[#allocation25_spill] sm:$0xff] }
 0x4f5   :  { %v1434_v50 = vadd.f32 %v2138_v48, %v2928_v49  ;;  %v1533_v51 = vadd.f32 %v2820_v40, %v1431_v47 }
 0x4f7   :  { %v1534_v52 = vadd.f32 %v2820_v40, %v1434_v50  ;;  %v2139_v1 = vpop.f32.mrb[88].mxu1 }
 0x4f8   :  { %v2140_v54 = vpop.f32.mrb[89].mxu1 }
 0x4f9   :  { %v1908_v63 = vpack.c.bf16 %v1534_v52, %v1533_v51  ;;  %v2141_v17 = vadd.f32 %v2140_v54, %v2139_v1  ;;  %v2142_v35 = vpop.f32.mrb[90].mxu1 }
 0x4fa   :  { %v2143_v57 = vpop.f32.mrb[91].mxu1 }
 0x4fb   :  { %1964 = vst [vmem:[#allocation10 + $0x28] sm:$0xff] %v1908_v63   ;;  %v1439_v14 = vadd.f32 %v2141_v17, %v2929_v41  ;;  %v2144_v5 = vadd.f32 %v2143_v57, %v2142_v35  ;;  %v2936_v63 = vld [vmem:[#allocation26_spill] sm:$0xff]  ;;  %v2937_v57 = vld [vmem:[#allocation27_spill] sm:$0xff] }
 0x4fd   :  { %v1442_v24 = vadd.f32 %v2144_v5, %v2930_v23  ;;  %v1535_v4 = vadd.f32 %v2820_v40, %v1439_v14 }
 0x4ff   :  { %v1536_v56 = vadd.f32 %v2820_v40, %v1442_v24  ;;  %v2145_v25 = vpop.f32.mrb[92].mxu1 }
 0x500   :  { %v2146_v26 = vpop.f32.mrb[93].mxu1 }
 0x501   :  { %v1913_v59 = vpack.c.bf16 %v1536_v56, %v1535_v4  ;;  %v2147_v62 = vadd.f32 %v2146_v26, %v2145_v25  ;;  %v2148_v10 = vpop.f32.mrb[94].mxu1 }
 0x502   :  { %v2149_v20 = vpop.f32.mrb[95].mxu1 }
 0x503   :  { %1965 = vst [vmem:[#allocation10 + $0x30] sm:$0xff] %v1913_v59   ;;  %v1447_v28 = vadd.f32 %v2147_v62, %v2931_v27  ;;  %v2150_v22 = vadd.f32 %v2149_v20, %v2148_v10  ;;  %v2938_v59 = vld [vmem:[#allocation28_spill] sm:$0xff] }
 0x505   :  { %v1450_v29 = vadd.f32 %v2150_v22, %v2932_v7  ;;  %v1537_v30 = vadd.f32 %v2820_v40, %v1447_v28 }
 0x507   :  { %v1538_v53 = vadd.f32 %v2820_v40, %v1450_v29  ;;  %v2151_v2 = vpop.f32.mrb[96].mxu1 }
 0x508   :  { %v2152_v33 = vpop.f32.mrb[97].mxu1 }
 0x509   :  { %v1918_v55 = vpack.c.bf16 %v1538_v53, %v1537_v30  ;;  %v2153_v31 = vadd.f32 %v2152_v33, %v2151_v2  ;;  %v2154_v32 = vpop.f32.mrb[98].mxu1  ;;  %v2939_v33 = vld [vmem:[#allocation29_spill] sm:$0xff] }
 0x50a   :  { %v2155_v16 = vpop.f32.mrb[99].mxu1 }
 0x50b   :  { %1966 = vst [vmem:[#allocation10 + $0x38] sm:$0xff] %v1918_v55   ;;  %v1455_v0 = vadd.f32 %v2153_v31, %v2933_v19  ;;  %v2156_v34 = vadd.f32 %v2155_v16, %v2154_v32 }
 0x50d   :  { %v1458_v15 = vadd.f32 %v2156_v34, %v2746_v21  ;;  %v1539_v58 = vadd.f32 %v2820_v40, %v1455_v0 }
 0x50f   :  { %v1540_v36 = vadd.f32 %v2820_v40, %v1458_v15  ;;  %v2157_v37 = vpop.f32.mrb[100].mxu1 }
 0x510   :  { %v2158_v6 = vpop.f32.mrb[101].mxu1 }
 0x511   :  { %v1923_v9 = vpack.c.bf16 %v1540_v36, %v1539_v58  ;;  %v2159_v38 = vadd.f32 %v2158_v6, %v2157_v37  ;;  %v2160_v39 = vpop.f32.mrb[102].mxu1 }
 0x512   :  { %v2161_v42 = vpop.f32.mrb[103].mxu1 }
 0x513   :  { %1967 = vst [vmem:[#allocation10 + $0x40] sm:$0xff] %v1923_v9   ;;  %v1463_v44 = vadd.f32 %v2159_v38, %v2934_v43  ;;  %v2162_v45 = vadd.f32 %v2161_v42, %v2160_v39 }
 0x515   :  { %v1466_v47 = vadd.f32 %v2162_v45, %v2935_v46  ;;  %v1541_v48 = vadd.f32 %v2820_v40, %v1463_v44 }
 0x517   :  { %v1542_v21 = vadd.f32 %v2820_v40, %v1466_v47  ;;  %v2163_v49 = vpop.f32.mrb[104].mxu1 }
 0x518   :  { %v2164_v50 = vpop.f32.mrb[105].mxu1 }
 0x519   :  { %v1928_v51 = vpack.c.bf16 %v1542_v21, %v1541_v48  ;;  %v2165_v52 = vadd.f32 %v2164_v50, %v2163_v49  ;;  %v2166_v1 = vpop.f32.mrb[106].mxu1 }
 0x51a   :  { %v2167_v54 = vpop.f32.mrb[107].mxu1 }
 0x51b   :  { %1968 = vst [vmem:[#allocation10 + $0x48] sm:$0xff] %v1928_v51   ;;  %v1471_v17 = vadd.f32 %v2165_v52, %v2936_v63  ;;  %v2168_v35 = vadd.f32 %v2167_v54, %v2166_v1 }
 0x51d   :  { %v1474_v41 = vadd.f32 %v2168_v35, %v2937_v57  ;;  %v1543_v14 = vadd.f32 %v2820_v40, %v1471_v17 }
 0x51f   :  { %v1544_v5 = vadd.f32 %v2820_v40, %v1474_v41  ;;  %v2169_v23 = vpop.f32.mrb[108].mxu1 }
 0x520   :  { %v2170_v24 = vpop.f32.mrb[109].mxu1 }
 0x521   :  { %v1933_v4 = vpack.c.bf16 %v1544_v5, %v1543_v14  ;;  %v2171_v56 = vadd.f32 %v2170_v24, %v2169_v23  ;;  %v2172_v25 = vpop.f32.mrb[110].mxu1 }
 0x522   :  { %v2173_v26 = vpop.f32.mrb[111].mxu1 }
 0x523   :  { %1969 = vst [vmem:[#allocation10 + $0x50] sm:$0xff] %v1933_v4   ;;  %v1479_v62 = vadd.f32 %v2171_v56, %v2938_v59  ;;  %v2174_v10 = vadd.f32 %v2173_v26, %v2172_v25 }
 0x525   :  { %v1482_v20 = vadd.f32 %v2174_v10, %v2758_v60  ;;  %v1545_v27 = vadd.f32 %v2820_v40, %v1479_v62 }
 0x527   :  { %v1546_v28 = vadd.f32 %v2820_v40, %v1482_v20  ;;  %v2175_v22 = vpop.f32.mrb[112].mxu1 }
 0x528   :  { %v2176_v7 = vpop.f32.mrb[113].mxu1 }
 0x529   :  { %v1938_v29 = vpack.c.bf16 %v1546_v28, %v1545_v27  ;;  %v2177_v30 = vadd.f32 %v2176_v7, %v2175_v22  ;;  %v2178_v53 = vpop.f32.mrb[114].mxu1 }
 0x52a   :  { %v2179_v2 = vpop.f32.mrb[115].mxu1 }
 0x52b   :  { %1970 = vst [vmem:[#allocation10 + $0x58] sm:$0xff] %v1938_v29   ;;  %v1487_v55 = vadd.f32 %v2177_v30, %v2939_v33  ;;  %v2180_v31 = vadd.f32 %v2179_v2, %v2178_v53 }
 0x52d   :  { %v1490_v32 = vadd.f32 %v2180_v31, %v2762_v11  ;;  %v1547_v16 = vadd.f32 %v2820_v40, %v1487_v55 }
 0x52f   :  { %v1548_v60 = vadd.f32 %v2820_v40, %v1490_v32  ;;  %v2181_v19 = vpop.f32.mrb[116].mxu1 }
 0x530   :  { %v2182_v0 = vpop.f32.mrb[117].mxu1 }
 0x531   :  { %v1943_v34 = vpack.c.bf16 %v1548_v60, %v1547_v16  ;;  %v2183_v15 = vadd.f32 %v2182_v0, %v2181_v19  ;;  %v2184_v58 = vpop.f32.mrb[118].mxu1 }
 0x532   :  { %v2185_v36 = vpop.f32.mrb[119].mxu1 }
 0x533   :  { %1971 = vst [vmem:[#allocation10 + $0x60] sm:$0xff] %v1943_v34   ;;  %v1495_v37 = vadd.f32 %v2183_v15, %v2764_v18  ;;  %v2186_v6 = vadd.f32 %v2185_v36, %v2184_v58 }
 0x535   :  { %v1498_v9 = vadd.f32 %v2186_v6, %v2766_v61  ;;  %v1549_v38 = vadd.f32 %v2820_v40, %v1495_v37 }
 0x537   :  { %v1550_v11 = vadd.f32 %v2820_v40, %v1498_v9  ;;  %v2187_v39 = vpop.f32.mrb[120].mxu1 }
 0x538   :  { %v2188_v42 = vpop.f32.mrb[121].mxu1 }
 0x539   :  { %v1948_v43 = vpack.c.bf16 %v1550_v11, %v1549_v38  ;;  %v2189_v44 = vadd.f32 %v2188_v42, %v2187_v39  ;;  %v2190_v45 = vpop.f32.mrb[122].mxu1 }
 0x53a   :  { %v2191_v46 = vpop.f32.mrb[123].mxu1 }
 0x53b   :  { %1972 = vst [vmem:[#allocation10 + $0x68] sm:$0xff] %v1948_v43   ;;  %v1503_v47 = vadd.f32 %v2189_v44, %v2771_v3  ;;  %v2192_v48 = vadd.f32 %v2191_v46, %v2190_v45 }
 0x53d   :  { %v1506_v21 = vadd.f32 %v2192_v48, %v2773_v12  ;;  %v1551_v18 = vadd.f32 %v2820_v40, %v1503_v47 }
 0x53f   :  { %v1552_v61 = vadd.f32 %v2820_v40, %v1506_v21  ;;  %v2193_v49 = vpop.f32.mrb[124].mxu1 }
 0x540   :  { %v2194_v50 = vpop.f32.mrb[125].mxu1 }
 0x541   :  { %v1953_v51 = vpack.c.bf16 %v1552_v61, %v1551_v18  ;;  %v2195_v52 = vadd.f32 %v2194_v50, %v2193_v49  ;;  %v2196_v1 = vpop.f32.mrb[126].mxu1 }
 0x542   :  { %v2197_v54 = vpop.f32.mrb[127].mxu1 }
 0x543   :  { %1973 = vst [vmem:[#allocation10 + $0x70] sm:$0xff] %v1953_v51   ;;  %v1511_v63 = vadd.f32 %v2195_v52, %v2778_v8  ;;  %v2198_v17 = vadd.f32 %v2197_v54, %v2196_v1 }
 0x545   :  { %v1514_v35 = vadd.f32 %v2198_v17, %v2780_v13  ;;  %v1553_v3 = vadd.f32 %v2820_v40, %v1511_v63 }
 0x547   :  { %v1554_v12 = vadd.f32 %v2820_v40, %v1514_v35 }
 0x549   :  { %v1958_v57 = vpack.c.bf16 %v1554_v12, %v1553_v3 }
 0x54b   :  { %1974 = vst [vmem:[#allocation10 + $0x78] sm:$0xff] %v1958_v57  }
 0x54c   :  { %2421 = shalt.err (!%p2418_p8)
}
 0x54d   :  { %s2422_s29 = scalar_lea.hbm %s2906_s6, 2048 }
 0x54e   :  { %p2423_p9 = scmp.ne.s32.totalorder %s2906_s6, %s2422_s29  ;;  %p2426_p10 = scmp.lt.u32.totalorder %s2422_s29, %s2906_s6 }
 0x550   :  { %p2428_p11 = pnand %p2426_p10, %p2423_p9 }
 0x552   :  { %2431 = shalt.err (!%p2428_p11)
}
 0x553   :  { %1726 = dma.vmem_to_hbm [thread:$0]  %s1721_s25, 2048, %s2906_s6, [#allocation4], %s2441_s7, %s2441_s7, %s2442_s8  }
 0x554   :  { %2438 = dma.done.wait [#allocation4], 2048  }
 0x555   :  { %2439 = vsyncadd [#allocation4], 4294965248 }
 0x556   :  { %1730 = vsyncpa [#allocation3], 1 }
 0x557   :  { %1731 = vsyncpa [#allocation6], 1 }
 0x558   :  { %1732 = vsyncpa [#allocation9], 1 }
 0x559   :  { %1733 = vsyncpa [#allocation4], 1 }

</bundles_post_ra>
